<compile_context>
chip_gen: v7x
topology: tpu7x:2x2x1
jax: 0.10.0
libtpu: 0.0.40
codegen_flags: <defaults>
</compile_context>

<pallas_src>
import numpy as np

import jax
import jax.numpy as jnp
from jax.experimental import pallas as pl
from jax.experimental.pallas import tpu as pltpu


def _round_up(x, m):
    return (x + m - 1) // m * m


def _vmem_cap_bytes():
    """Generation-aware scoped-VMEM cap (v7x has only 64 MiB per TC)."""
    try:
        info = pltpu.get_tpu_info()
        cap = getattr(info, "vmem_capacity_bytes", None)
        if cap:
            return int(0.55 * cap)
    except Exception:
        pass
    return 48 << 20


def _grad_output_kernel(x_ref, w1_ref, b1_ref, w2_ref, w1t_ref, e_ref, g_ref):
    """One tile of atoms: forward energy contribution + analytic gradient."""
    x = x_ref[...]                                    # (tile_n, D_in)  matmul dtype
    w1 = w1_ref[...]                                  # (D_in, H)       matmul dtype
    b1 = b1_ref[...]                                  # (1, H)          f32
    w2 = w2_ref[...]                                  # (1, H)          f32
    w1t = w1t_ref[...]                                # (H, D_in)       matmul dtype, sign folded in

    # forward: z = x @ W1 + b1 (f32 accumulation), elementwise math in f32
    z = jnp.dot(x, w1, preferred_element_type=jnp.float32) + b1   # (tile_n, H)
    h = jnp.tanh(z)
    hw2 = h * w2                                      # reused below

    # per-tile contribution to the scalar `of` field.  Padded rows (x == 0)
    # contribute exactly sum(tanh(b1)*w2) each; the wrapper subtracts that,
    # so no validity mask is needed in the hot path.
    e_ref[...] = jnp.full(e_ref.shape, jnp.sum(hw2), dtype=jnp.float32)

    # dE/dz = (1 - h^2) * w2 = w2 - h * hw2 ; gradient = dz @ (sign*W1)^T
    dz = w2 - h * hw2                                 # (tile_n, H)  f32
    g = jnp.dot(dz.astype(w1t.dtype), w1t,
                preferred_element_type=jnp.float32)   # (tile_n, D_in)
    g_ref[...] = g.astype(g_ref.dtype)


def gradient_output(data, params, *, of="total_energy", wrt="node_features",
                    out_field=None, sign=-1.0, tile_n=2048,
                    matmul_dtype=jnp.bfloat16):
    """JAX/Pallas equivalent of GradientOutput.forward for the synthetic func."""
    sign = float(sign)
    assert sign in (1.0, -1.0)
    if out_field is None:
        out_field = f"d({of})/d({wrt})"

    x = data[wrt]
    w1, b1, w2 = params["w1"], params["b1"], params["w2"]
    n, d_in = x.shape
    hdim = w1.shape[1]
    out_dtype = x.dtype

    # --- tile sizing -------------------------------------------------------
    # Large tiles amortize the ~0.35us per-grid-step overhead and keep the
    # HBM-bound path near roofline.  For small N we still split into >= 2
    # tiles so the "parallel" grid axis can shard across v7x's two TCs.
    n8 = _round_up(n, 8)
    tile_req = max(8, _round_up(int(tile_n), 8))
    if n8 > tile_req:
        tile_n = tile_req
    elif n8 >= 16:
        tile_n = _round_up((n8 + 1) // 2, 8)   # two (or more) tiles
    else:
        tile_n = n8
    n_pad = _round_up(n, tile_n)
    n_tiles = n_pad // tile_n
    pad_rows = n_pad - n

    # --- grid-invariant weights --------------------------------------------
    # sign and the transpose are folded into w1_t so both in-kernel matmuls
    # are plain (M,K)@(K,N) MXU ops with no per-step layout shuffle.
    w1_mm = w1.astype(matmul_dtype)
    w1t_mm = (sign * w1).T.astype(matmul_dtype)
    b1_f32 = b1.astype(jnp.float32)
    w2_f32 = w2.astype(jnp.float32)
    x_mm = x.astype(matmul_dtype)
    if pad_rows:
        x_mm = jnp.pad(x_mm, ((0, pad_rows), (0, 0)))

    # --- explicit VMEM budget ------------------------------------------------
    msize = np.dtype(matmul_dtype).itemsize
    gsize = np.dtype(out_dtype).itemsize
    vmem_bytes = (
        2 * tile_n * d_in * msize                    # x tile, double-buffered
        + 2 * tile_n * d_in * gsize                  # g tile, double-buffered
        + 2 * (2 * d_in * hdim * msize + 2 * hdim * 4)   # W1, W1^T, b1, w2
        + 2 * 1 * 128 * 4                            # per-tile energy block
        + 8 * tile_n * hdim * 4                      # temporaries (z,h,hw2,dz,g)
        + (2 << 20)
    )
    vmem_limit = int(min(max(vmem_bytes, 4 << 20), max(_vmem_cap_bytes(), 16 << 20)))

    # TODO(synk): on v5e, if a trace shows exposed x-input DMA, set
    #   pipeline_mode=pl.Buffered(3) on the x BlockSpec only.
    e_partials, g_pad = pl.pallas_call(
        _grad_output_kernel,
        out_shape=(
            jax.ShapeDtypeStruct((n_tiles, 1, 128), jnp.float32),  # energy partials
            jax.ShapeDtypeStruct((n_pad, d_in), out_dtype),        # d(of)/d(wrt)
        ),
        grid_spec=pltpu.PrefetchScalarGridSpec(
            num_scalar_prefetch=0,
            grid=(n_tiles,),
            in_specs=[
                pl.BlockSpec((tile_n, d_in), lambda i: (i, 0)),  # x tile
                pl.BlockSpec((d_in, hdim), lambda i: (0, 0)),    # W1 (whole)
                pl.BlockSpec((1, hdim), lambda i: (0, 0)),       # b1 (whole)
                pl.BlockSpec((1, hdim), lambda i: (0, 0)),       # w2 (whole)
                pl.BlockSpec((hdim, d_in), lambda i: (0, 0)),    # (sign*W1)^T (whole)
            ],
            out_specs=[
                pl.BlockSpec((1, 1, 128), lambda i: (i, 0, 0)),  # energy partial
                pl.BlockSpec((tile_n, d_in), lambda i: (i, 0)),  # grad tile
            ],
        ),
        compiler_params=pltpu.CompilerParams(
            dimension_semantics=("parallel",),   # independent tiles: megacore OK
            vmem_limit_bytes=vmem_limit),
    )(x_mm, w1_mm, b1_f32, w2_f32, w1t_mm)

    # tiny final reduction over per-tile partials, done outside the kernel.
    e = jnp.sum(e_partials[:, 0, 0])
    if pad_rows:
        # each padded (zero) row contributed exactly sum(tanh(b1)*w2)
        e = e - pad_rows * jnp.sum(jnp.tanh(b1_f32) * w2_f32)
    g = g_pad[:n] if pad_rows else g_pad

    # TODO(synk): if production D_in < 128, gradient stores become masked
    # partial stores; pad D_in to 128 or flatten to a lane-dense output slab.

    out = dict(data)
    out[of] = e
    out[out_field] = g
    return out


# Pure-JAX reference (the "func" that GradientOutput wraps), used with jax.grad
# to check the Pallas kernel reproduces torch.autograd.grad semantics.
def _energy_ref(x, params):
    h = jnp.tanh(x @ params["w1"] + params["b1"])
    return jnp.sum(h * params["w2"])


def _check(n, d_in, hdim, sign, key, tile_n=2048, matmul_dtype=jnp.float32):
    k_x, k_w1, k_b1, k_w2 = jax.random.split(key, 4)
    x = jax.random.normal(k_x, (n, d_in), dtype=jnp.float32)
    params = {
        "w1": jax.random.normal(k_w1, (d_in, hdim), dtype=jnp.float32) * 0.1,
        "b1": jax.random.normal(k_b1, (1, hdim), dtype=jnp.float32) * 0.1,
        "w2": jax.random.normal(k_w2, (1, hdim), dtype=jnp.float32) * 0.1,
    }

    data = {"node_features": x}
    out = gradient_output(data, params, of="total_energy", wrt="node_features",
                          sign=sign, tile_n=tile_n, matmul_dtype=matmul_dtype)
    g = out["d(total_energy)/d(node_features)"]
    jax.block_until_ready(g)

    e_ref = _energy_ref(x, params)
    g_ref = sign * jax.grad(_energy_ref)(x, params)
    assert g.shape == x.shape

    if matmul_dtype == jnp.float32:
        assert jnp.allclose(out["total_energy"], e_ref, rtol=5e-4, atol=5e-3), (
            out["total_energy"], e_ref)
        assert jnp.allclose(g, g_ref, rtol=5e-4, atol=5e-4)
    else:
        # bf16 MXU operands (f32 accumulation): loosen tolerances.
        e_err = jnp.abs(out["total_energy"] - e_ref)
        assert e_err < 2e-2 * jnp.abs(e_ref) + 1.0, (out["total_energy"], e_ref)
        g_err = jnp.max(jnp.abs(g - g_ref)) / (jnp.max(jnp.abs(g_ref)) + 1e-6)
        assert g_err < 5e-2, g_err


if __name__ == "__main__":
    key = jax.random.PRNGKey(0)
    k1, k2, k3 = jax.random.split(key, 3)

    SIGN = -1.0  # "forces" convention

    # f32 matmul path (bit-faithful to autograd semantics), multi-tile split
    _check(n=1024, d_in=128, hdim=128, sign=SIGN, key=k1,
           matmul_dtype=jnp.float32)
    # ragged atom count: exercises padding + wrapper-side energy correction
    _check(n=250, d_in=128, hdim=128, sign=SIGN, key=k2,
           matmul_dtype=jnp.float32)
    # default bf16-MXU path (v6e/v7x-friendly), ragged, loose tolerances
    _check(n=250, d_in=128, hdim=128, sign=SIGN, key=k3,
           matmul_dtype=jnp.bfloat16)

    print("KERNEL_OK")
</pallas_src>

<mosaic_0001>
module attributes {stable_mosaic.version = 11 : i64} {
  func.func @_grad_output_kernel(%arg0: i32, %arg1: memref<512x128xf32, #tpu.memory_space<vmem>>, %arg2: memref<128x128xf32, #tpu.memory_space<vmem>>, %arg3: memref<1x128xf32, #tpu.memory_space<vmem>>, %arg4: memref<1x128xf32, #tpu.memory_space<vmem>>, %arg5: memref<128x128xf32, #tpu.memory_space<vmem>>, %arg6: memref<1x1x128xf32, #tpu.memory_space<vmem>>, %arg7: memref<512x128xf32, #tpu.memory_space<vmem>>) attributes {dimension_semantics = [#tpu.dimension_semantics<parallel>], iteration_bounds = array<i64: 2>, scalar_prefetch = 0 : i64, scratch_operands = 0 : i64, tpu.core_type = #tpu.core_type<tc>, window_params = [{transform_indices = @transform_0, window_bounds = array<i64: 512, 128>}, {pipeline_mode = #tpu.pipeline_mode<synchronous>, transform_indices = @transform_1, window_bounds = array<i64: 128, 128>}, {pipeline_mode = #tpu.pipeline_mode<synchronous>, transform_indices = @transform_2, window_bounds = array<i64: 1, 128>}, {pipeline_mode = #tpu.pipeline_mode<synchronous>, transform_indices = @transform_3, window_bounds = array<i64: 1, 128>}, {pipeline_mode = #tpu.pipeline_mode<synchronous>, transform_indices = @transform_4, window_bounds = array<i64: 128, 128>}, {transform_indices = @transform_5, window_bounds = array<i64: 1, 1, 128>}, {transform_indices = @transform_6, window_bounds = array<i64: 512, 128>}]} {
    %c0 = arith.constant 0 : index
    %c0_0 = arith.constant 0 : index
    %0 = vector.load %arg1[%c0, %c0_0] : memref<512x128xf32, #tpu.memory_space<vmem>>, vector<512x128xf32>
    %c0_1 = arith.constant 0 : index
    %c0_2 = arith.constant 0 : index
    %1 = vector.load %arg2[%c0_1, %c0_2] : memref<128x128xf32, #tpu.memory_space<vmem>>, vector<128x128xf32>
    %c0_3 = arith.constant 0 : index
    %c0_4 = arith.constant 0 : index
    %2 = vector.load %arg3[%c0_3, %c0_4] : memref<1x128xf32, #tpu.memory_space<vmem>>, vector<1x128xf32>
    %c0_5 = arith.constant 0 : index
    %c0_6 = arith.constant 0 : index
    %3 = vector.load %arg4[%c0_5, %c0_6] : memref<1x128xf32, #tpu.memory_space<vmem>>, vector<1x128xf32>
    %c0_7 = arith.constant 0 : index
    %c0_8 = arith.constant 0 : index
    %4 = vector.load %arg5[%c0_7, %c0_8] : memref<128x128xf32, #tpu.memory_space<vmem>>, vector<128x128xf32>
    %cst = arith.constant dense<0.000000e+00> : vector<512x128xf32>
    %5 = tpu.matmul %0, %1, %cst {dimension_numbers = #tpu.dot_dimension_numbers<[1], [0], [0], [1], [0, 0, 1, 1], [], []>} : vector<512x128xf32>, vector<128x128xf32>, vector<512x128xf32> -> vector<512x128xf32>
    %6 = vector.broadcast %2 : vector<1x128xf32> to vector<512x128xf32>
    %7 = arith.addf %5, %6 : vector<512x128xf32>
    %8 = math.tanh %7 : vector<512x128xf32>
    %9 = vector.broadcast %3 : vector<1x128xf32> to vector<512x128xf32>
    %10 = arith.mulf %8, %9 : vector<512x128xf32>
    %11 = vector.shape_cast %10 : vector<512x128xf32> to vector<1x512x128xf32>
    %cst_9 = arith.constant dense<0.000000e+00> : vector<1xf32>
    %12 = vector.multi_reduction <add>, %11, %cst_9 [1, 2] : vector<1x512x128xf32> to vector<1xf32>
    %13 = vector.shape_cast %12 : vector<1xf32> to vector<1x1x1xf32>
    %14 = vector.extract %13[0, 0, 0] : f32 from vector<1x1x1xf32>
    %15 = vector.broadcast %14 : f32 to vector<1x1x128xf32>
    %c0_10 = arith.constant 0 : index
    %c0_11 = arith.constant 0 : index
    %c0_12 = arith.constant 0 : index
    %16 = vector.load %arg6[%c0_10, %c0_11, %c0_12] : memref<1x1x128xf32, #tpu.memory_space<vmem>>, vector<1x1x128xf32>
    tpu.vector_store %arg6[%c0_10, %c0_11, %c0_12], %15 {strides = array<i32>} : memref<1x1x128xf32, #tpu.memory_space<vmem>>, vector<1x1x128xf32>,
    %17 = arith.mulf %8, %10 : vector<512x128xf32>
    %18 = vector.broadcast %3 : vector<1x128xf32> to vector<512x128xf32>
    %19 = arith.subf %18, %17 : vector<512x128xf32>
    %cst_13 = arith.constant dense<0.000000e+00> : vector<512x128xf32>
    %20 = tpu.matmul %19, %4, %cst_13 {dimension_numbers = #tpu.dot_dimension_numbers<[1], [0], [0], [1], [0, 0, 1, 1], [], []>} : vector<512x128xf32>, vector<128x128xf32>, vector<512x128xf32> -> vector<512x128xf32>
    %c0_14 = arith.constant 0 : index
    %c0_15 = arith.constant 0 : index
    %21 = vector.load %arg7[%c0_14, %c0_15] : memref<512x128xf32, #tpu.memory_space<vmem>>, vector<512x128xf32>
    tpu.vector_store %arg7[%c0_14, %c0_15], %20 {strides = array<i32>} : memref<512x128xf32, #tpu.memory_space<vmem>>, vector<512x128xf32>,
    return
  }
  func.func @transform_0(%arg0: i32) -> (i32, i32) {
    %c0_i32 = arith.constant 0 : i32
    %c0_i32_0 = arith.constant 0 : i32
    return %arg0, %c0_i32 : i32, i32
  }
  func.func @transform_1(%arg0: i32) -> (i32, i32) {
    %c0_i32 = arith.constant 0 : i32
    %c0_i32_0 = arith.constant 0 : i32
    %c0_i32_1 = arith.constant 0 : i32
    return %c0_i32, %c0_i32_0 : i32, i32
  }
  func.func @transform_2(%arg0: i32) -> (i32, i32) {
    %c0_i32 = arith.constant 0 : i32
    %c0_i32_0 = arith.constant 0 : i32
    %c0_i32_1 = arith.constant 0 : i32
    return %c0_i32, %c0_i32_0 : i32, i32
  }
  func.func @transform_3(%arg0: i32) -> (i32, i32) {
    %c0_i32 = arith.constant 0 : i32
    %c0_i32_0 = arith.constant 0 : i32
    %c0_i32_1 = arith.constant 0 : i32
    return %c0_i32, %c0_i32_0 : i32, i32
  }
  func.func @transform_4(%arg0: i32) -> (i32, i32) {
    %c0_i32 = arith.constant 0 : i32
    %c0_i32_0 = arith.constant 0 : i32
    %c0_i32_1 = arith.constant 0 : i32
    return %c0_i32, %c0_i32_0 : i32, i32
  }
  func.func @transform_5(%arg0: i32) -> (i32, i32, i32) {
    %c0_i32 = arith.constant 0 : i32
    %c0_i32_0 = arith.constant 0 : i32
    %c0_i32_1 = arith.constant 0 : i32
    return %arg0, %c0_i32, %c0_i32_0 : i32, i32, i32
  }
  func.func @transform_6(%arg0: i32) -> (i32, i32) {
    %c0_i32 = arith.constant 0 : i32
    %c0_i32_0 = arith.constant 0 : i32
    return %arg0, %c0_i32 : i32, i32
  }
}

</mosaic_0001>

<bundles_post_ra>
// kernel: tpu_custom_call.1
= control target key start
LH: loop header
LB: loop body
LE: loop exit
PB: predicated region body
PF: predicated region fallthrough
CT: control target
= control target key end

     0   :  { %12 = vsyncpa [#allocation3], 0  ;;  %s3283_s0 = inlined_call_operand.hbm [shape: f32[1024,128], index: 0, kind: input, shape index: {}]   ;;  %s3284_s1 = inlined_call_operand.hbm [shape: f32[128,128], index: 1, kind: input, shape index: {}]   ;;  %s3285_s2 = inlined_call_operand.vmem [shape: f32[1,128], index: 2, kind: input, shape index: {}]   ;;  %s3286_s3 = inlined_call_operand.vmem [shape: f32[1,128], index: 3, kind: input, shape index: {}]   ;;  %s3287_s4 = inlined_call_operand.hbm [shape: f32[128,128], index: 4, kind: input, shape index: {}]   ;;  %s3288_s5 = inlined_call_operand.hbm [shape: f32[2,1,128], index: 5, kind: output, shape index: {0}]   ;;  %s3289_s6 = inlined_call_operand.hbm [shape: f32[1024,128], index: 6, kind: output, shape index: {1}]  }
   0x1   :  { %14 = vsyncpa [#allocation3 + $0x1], 0 }
   0x2   :  { %15 = vsyncpa [#allocation6], 0 }
   0x3   :  { %16 = vsyncpa [#allocation4], 0 }
   0x4   :  { %18 = vsyncpa [#allocation4 + $0x1], 0 }
   0x5   :  { %19 = vsyncpa [#allocation10], 0 }
   0x6   :  { %21 = vsyncpa [#allocation10 + $0x1], 0  ;;  %s2681_s21 = smov 0   ;;  %s2683_s22 = smov 0  }
   0x7   :  { %s2685_s23 = smov 0   ;;  %s2687_s24 = smov 0  }
   0x8 LB: > { %s2702_s25 = sadd.s32 4294967295, %s2635_s24   ;;  %s1736_s26 = sadd.s32 4294967294, %s2635_s24   ;;  %s2635_s24 = sphi %s2687_s24, %s3309_s24   ;;  %s2631_s23 = sphi %s2685_s23, %s3308_s23   ;;  %s2627_s22 = sphi %s2683_s22, %s3307_s22   ;;  %s2623_s21 = sphi %s2681_s21, %s3306_s21  }
   0x9   : > { %p47_p0 = scmp.ne.s32.totalorder %s2627_s22, %s2623_s21  ;;  %p3290_p1 = scmp.eq.s32.totalorder %s2702_s25, 0 }
   0xa   : > { %p161_p3 = scmp.eq.s32.totalorder %s1736_s26, 1  ;;  %p1737_p5 = scmp.ge.s32.totalorder %s2635_s24, 1 }
   0xb   : > { %p2711_p4 = por %p3290_p1, %p47_p0  ;;  %p194_p7 = scmp.lt.s32.totalorder %s2635_s24, 3 }
   0xc   : > { %p2716_p6 = por %p161_p3, %p47_p0  ;;  %s2637_s30 = smov [#allocation5]  }
   0xd   : > { %s3293_s27 = scalar_select %p2711_p4, 1, 0 }
   0xe   : > { %s3294_s28 = scalar_select %p2716_p6, 1, 0 }
   0xf   : > { %p2721_p8 = pnand %p1737_p5, %p194_p7  ;;  %s206_s7 = sshll.u32 %s2637_s30, 4  ;;  %s2725_s7 = int_to_ptr.vmem [resolvable:$true] %s206_s7 }
  0x10   : > { %s2638_s9 = smov [#allocation7]   ;;  %s2447_s13 = scalar_lea.hbm %s3284_s1, 2048 }
  0x11   : > { %p2255_p9 = pneg %p2721_p8  ;;  %s225_s10 = sshll.u32 %s2638_s9, 4  ;;  %s2736_s10 = int_to_ptr.vmem [resolvable:$true] %s225_s10 }
  0x12   : > { %p2448_p12 = scmp.ne.s32.totalorder %s3284_s1, %s2447_s13  ;;  %p2454_p5 = scmp.lt.u32.totalorder %s2447_s13, %s3284_s1 }
  0x13   : > { %p2732_p11 = pnand %p2255_p9, %p3290_p1 }
  0x15   : > { %p2449_p13 = pneg %p2732_p11 }
  0x17   : > { %p2450_p0 = pnand %p2449_p13, %p2448_p12 }
  0x19   : > { %p2451_p3 = pneg %p2450_p0 }
  0x1b   : > { %p2456_p7 = pnand %p2454_p5, %p2451_p3 }
  0x1d   : > { %2459 = shalt.err (!%p2456_p7)
}
  0x1e   : > { %s2460_s18 = scalar_lea.vmem %s2725_s7, 2048  ;;  %p2468_p2 = scmp.lt.s32.totalorder %s2725_s7, %s2725_s7 }
  0x1f   : > { %p2461_p9 = scmp.ne.s32.totalorder %s2725_s7, %s2460_s18  ;;  %p2469_p12 = scmp.lt.s32.totalorder %s2460_s18, %s2460_s18 }
  0x21   : > { %p2463_p10 = pnand %p2461_p9, %p2449_p13  ;;  %p2470_p0 = por %p2469_p12, %p2468_p2 }
  0x23   : > { %p2464_p1 = pneg %p2463_p10 }
  0x25   : > { %p2471_p6 = pnand %p2470_p0, %p2464_p1 }
  0x27   : > { %2474 = shalt.err (!%p2471_p6)
}
  0x28   : > { %s2639_s19 = smov 128   ;;  %s2640_s20 = smov 8  }
  0x29   : > { %2258 = dma.hbm_to_vmem [thread:$0]  (!%p2732_p11), %s3284_s1, 2048, %s2725_s7, [#allocation6], %s2639_s19, %s2639_s19, %s2640_s20  }
  0x2a   : > { %s2475_s12 = scalar_lea.hbm %s3287_s4, 2048 }
  0x2b   : > { %p2476_p1 = scmp.ne.s32.totalorder %s3287_s4, %s2475_s12  ;;  %p2482_p10 = scmp.lt.u32.totalorder %s2475_s12, %s3287_s4 }
  0x2d   : > { %p2478_p2 = pnand %p2476_p1, %p2449_p13 }
  0x2f   : > { %p2479_p6 = pneg %p2478_p2 }
  0x31   : > { %p2484_p3 = pnand %p2482_p10, %p2479_p6 }
  0x33   : > { %2487 = shalt.err (!%p2484_p3)
}
  0x34   : > { %s2488_s7 = scalar_lea.vmem %s2736_s10, 2048  ;;  %p2496_p12 = scmp.lt.s32.totalorder %s2736_s10, %s2736_s10 }
  0x35   : > { %p2489_p5 = scmp.ne.s32.totalorder %s2736_s10, %s2488_s7  ;;  %p2497_p0 = scmp.lt.s32.totalorder %s2488_s7, %s2488_s7 }
  0x37   : > { %p2491_p7 = pnand %p2489_p5, %p2449_p13  ;;  %p2498_p1 = por %p2497_p0, %p2496_p12 }
  0x39   : > { %p2492_p9 = pneg %p2491_p7 }
  0x3b   : > { %p2499_p2 = pnand %p2498_p1, %p2492_p9 }
  0x3d   : > { %2502 = shalt.err (!%p2499_p2)
}
  0x3e   : > { %2261 = dma.hbm_to_vmem [thread:$0]  (!%p2732_p11), %s3287_s4, 2048, %s2736_s10, [#allocation6], %s2639_s19, %s2639_s19, %s2640_s20  }
  0x3f   : > { %s2797_s8 = sadd.s32 1, %s2635_s24   ;;  %s34_s26 = sadd.s32 1, %s2631_s23 }
  0x40   : > { %s31_s30 = ssub.s32 %s2635_s24, %s2797_s8  ;;  %p41_p13 = scmp.ne.s32.totalorder %s2631_s23, %s2627_s22 }
  0x41   : > { %p32_p6 = scmp.eq.s32.totalorder %s31_s30, 0  ;;  %p42_p10 = scmp.eq.s32.totalorder %s2635_s24, 0 }
  0x42   : > { %p3297_p3 = scmp.eq.s32.totalorder %s2702_s25, 1  ;;  %p2275_p7 = scmp.lt.s32.totalorder %s2635_s24, 2 }
  0x43   : > { %s2813_s11 = scalar_select %p32_p6, %s2631_s23, %s34_s26  }
  0x44   : > { %p2807_p5 = por %p3297_p3, %p41_p13  ;;  %p43_p9 = por %p42_p10, %p41_p13 }
  0x45   : > { %s239_s12 = sand.u32 1, %s2631_s23   ;;  %s1757_s10 = sshll.u32 %s2635_s24, 13 }
  0x46   : > { %s3298_s9 = scalar_select %p2807_p5, 1, 0 }
  0x47   : > { %s1741_s13 = sshll.u32 %s239_s12, 9  ;;  %s2820_s16 = scalar_lea.hbm %s3283_s0, %s1757_s10 }
  0x48   : > { %s243_s7 = scalar_lea.vmem [#allocation2], %s1741_s13  ;;  %p2824_p11 = pnand %p2275_p7, %p43_p9 }
  0x49   : > { %s250_s17 = sshll.u32 %s243_s7, 4  ;;  %s2828_s26 = scalar_lea.sflag [#allocation3], %s239_s12  ;;  %s2822_s17 = int_to_ptr.vmem [resolvable:$true] %s250_s17 }
  0x4a   : > { %s2503_s30 = scalar_lea.hbm %s2820_s16, 8192  ;;  %p2505_p0 = pneg %p2824_p11 }
  0x4b   : > { %p2504_p12 = scmp.ne.s32.totalorder %s2820_s16, %s2503_s30  ;;  %s2508_s14 = scalar_lea.hbm %s3283_s0, 16384 }
  0x4c   : > { %p2509_p13 = scmp.lt.u32.totalorder %s2820_s16, %s3283_s0  ;;  %p2510_p6 = scmp.lt.u32.totalorder %s2508_s14, %s2503_s30 }
  0x4d   : > { %p2506_p1 = pnand %p2505_p0, %p2504_p12  ;;  %p2512_p3 = scmp.lt.u32.totalorder %s2503_s30, %s2820_s16 }
  0x4e   : > { %p2511_p10 = por %p2510_p6, %p2509_p13 }
  0x4f   : > { %p2507_p2 = pneg %p2506_p1 }
  0x50   : > { %p2513_p7 = por %p2512_p3, %p2511_p10 }
  0x52   : > { %p2514_p9 = pnand %p2513_p7, %p2507_p2 }
  0x54   : > { %2517 = shalt.err (!%p2514_p9)
}
  0x55   : > { %s2518_s12 = scalar_lea.vmem %s2822_s17, 8192  ;;  %s2641_s13 = smov [#allocation2]  }
  0x56   : > { %p2519_p12 = scmp.ne.s32.totalorder %s2822_s17, %s2518_s12  ;;  %s2523_s10 = sshll.u32 %s2641_s13, 4  ;;  %s2524_s10 = int_to_ptr.vmem [resolvable:$false] %s2523_s10 }
  0x57   : > { %s2525_s15 = scalar_lea.vmem %s2524_s10, 16384  ;;  %p2526_p4 = scmp.lt.s32.totalorder %s2822_s17, %s2524_s10 }
  0x58   : > { %p2521_p1 = pnand %p2519_p12, %p2505_p0  ;;  %p2527_p13 = scmp.lt.s32.totalorder %s2525_s15, %s2518_s12 }
  0x5a   : > { %p2522_p5 = pneg %p2521_p1  ;;  %p2528_p6 = por %p2527_p13, %p2526_p4 }
  0x5c   : > { %p2529_p10 = pnand %p2528_p6, %p2522_p5 }
  0x5e   : > { %2532 = shalt.err (!%p2529_p10)
}
  0x5f   : > { %2265 = dma.hbm_to_vmem [thread:$0]  (!%p2824_p11), %s2820_s16, 8192, %s2822_s17, %s2828_s26, %s2639_s19, %s2639_s19, %s2640_s20  }
  0x60   : > { %262 = sbr.rel (%p2721_p8) target bundleno = 743 (0x2e7), region = 40  ;;  %s2862_s30 = sand.u32 (!%p2721_p8), 1, %s2627_s22  }
  0x61   : > { %s1745_s14 = sshll.u32 (!%p2721_p8), %s2862_s30, 9  ;;  %s265_s7 = scalar_lea.sflag (!%p2721_p8), [#allocation3], %s2862_s30 }
  0x62   : > { %s2868_s18 = scalar_lea.vmem (!%p2721_p8), [#allocation2], %s1745_s14  ;;  %p3300_p4 = scmp.ne.s32.totalorder (!%p2721_p8), %s3293_s27, 0 }
  0x67   : > { %2606 = dma.done.wait (%p3300_p4), %s265_s7, 8192  }
  0x68   : > { %2608 = vsyncadd (%p3300_p4), %s265_s7, 4294959104  ;;  %p3301_p5 = scmp.eq.s32.totalorder %s2702_s25, 0 }
  0x6a   : > { %2610 = dma.done.wait (%p3301_p5), [#allocation6], 4096   ;;  %p3302_p8 = pmov %p3301_p5 }
  0x6b   : > { %v375_v0 = vld [vmem:[#allocation5] sm:$0xff]  ;;  %v376_v1 = vld [vmem:[#allocation5 + $0x8] sm:$0xff]  ;;  %v377_v2 = vld [vmem:[#allocation5 + $0x10] sm:$0xff]  ;;  %s3135_s13 = scalar_lea.vmem [#allocation9], %s1745_s14  ;;  %s301_s10 = scalar_lea.vmem [#allocation8], %s2862_s30 }
  0x6c   : > { %2612 = vsyncadd (%p3302_p8), [#allocation6], 4294963200  ;;  %v2175_v3 = vpack.c.bf16 %v376_v1, %v375_v0  ;;  %v378_v4 = vld [vmem:[#allocation5 + $0x18] sm:$0xff]  ;;  %v379_v6 = vld [vmem:[#allocation5 + $0x20] sm:$0xff]  ;;  %s1603_s15 = sshll.u32 %s301_s10, 4  ;;  %s1752_s14 = sshll.u32 %s2702_s25, 4  ;;  %s3197_s15 = int_to_ptr.vmem [resolvable:$true] %s1603_s15 }
  0x6d   : > { %v2179_v5 = vpack.c.bf16 %v378_v4, %v377_v2  ;;  %v380_v7 = vld [vmem:[#allocation5 + $0x28] sm:$0xff]  ;;  %v311_v9 = vld [vmem:[%s2868_s18] sm:$0xff]  ;;  %v381_v10 = vld [vmem:[#allocation5 + $0x30] sm:$0xff]  ;;  %s3202_s29 = scalar_lea.hbm %s3288_s5, %s1752_s14  ;;  %s1586_s19 = scalar_lea.sflag [#allocation4], %s2862_s30 }
  0x6e   : > { %2176 = vmatprep.subr.bf16.mxu0 %v2175_v3  ;;  %v2183_v8 = vpack.c.bf16 %v380_v7, %v379_v6  ;;  %v382_v11 = vld [vmem:[#allocation5 + $0x38] sm:$0xff]  ;;  %1951 = vmatprep.mubr.f32.mxu0 %v311_v9  ;;  %v383_v13 = vld [vmem:[#allocation5 + $0x40] sm:$0xff]  ;;  %v384_v14 = vld [vmem:[#allocation5 + $0x48] sm:$0xff]  ;;  %s2533_s20 = scalar_lea.vmem %s3197_s15, 16  ;;  %p3303_p0 = scmp.ne.s32.totalorder %s3298_s9, 0 }
  0x6f   : > { %2178 = vmatpush3.bf16.msra.mxu0 %v2175_v3  ;;  %v2187_v12 = vpack.c.bf16 %v382_v11, %v381_v10  ;;  %v2191_v15 = vpack.c.bf16 %v384_v14, %v383_v13  ;;  %v385_v16 = vld [vmem:[#allocation5 + $0x50] sm:$0xff]  ;;  %v386_v17 = vld [vmem:[#allocation5 + $0x58] sm:$0xff]  ;;  %v387_v19 = vld [vmem:[#allocation5 + $0x60] sm:$0xff]  ;;  %p2534_p11 = scmp.ne.s32.totalorder %s3197_s15, %s2533_s20  ;;  %s2642_s16 = smov [#allocation8]  }
  0x70   : > { %2180 = vmatprep.subr.bf16.mxu0 %v2179_v5  ;;  %v2195_v18 = vpack.c.bf16 %v386_v17, %v385_v16  ;;  %v388_v20 = vld [vmem:[#allocation5 + $0x68] sm:$0xff]  ;;  %v389_v22 = vld [vmem:[#allocation5 + $0x70] sm:$0xff]  ;;  %v390_v23 = vld [vmem:[#allocation5 + $0x78] sm:$0xff]  ;;  %s2537_s17 = sshll.u32 %s2642_s16, 4  ;;  %s2538_s17 = int_to_ptr.vmem [resolvable:$false] %s2537_s17 }
  0x71   : > { %v2199_v21 = vpack.c.bf16 %v388_v20, %v387_v19  ;;  %v2203_v24 = vpack.c.bf16 %v390_v23, %v389_v22  ;;  %v393_v25 = vld [vmem:[#allocation7] sm:$0xff]  ;;  %v394_v26 = vld [vmem:[#allocation7 + $0x8] sm:$0xff]  ;;  %v395_v27 = vld [vmem:[#allocation7 + $0x10] sm:$0xff]  ;;  %p2535_p2 = pnand %p2534_p11, %p3303_p0  ;;  %s2539_s26 = scalar_lea.vmem %s2538_s17, 32 }
  0x72   : > { %v312_v28 = vld [vmem:[%s2868_s18 + $0x8] sm:$0xff]  ;;  %v2207_v29 = vpack.c.bf16 %v394_v26, %v393_v25  ;;  %v396_v30 = vld [vmem:[#allocation7 + $0x18] sm:$0xff]  ;;  %v313_v31 = vld [vmem:[%s2868_s18 + $0x10] sm:$0xff]  ;;  %p2540_p7 = scmp.lt.s32.totalorder %s3197_s15, %s2538_s17  ;;  %p2541_p9 = scmp.lt.s32.totalorder %s2539_s26, %s2533_s20 }
  0x73   : > { %2182 = vmatpush3.bf16.msra.mxu0 %v2179_v5  ;;  %v2211_v32 = vpack.c.bf16 %v396_v30, %v395_v27  ;;  %v397_v33 = vld [vmem:[#allocation7 + $0x20] sm:$0xff]  ;;  %v398_v34 = vld [vmem:[#allocation7 + $0x28] sm:$0xff]  ;;  %v314_v35 = vld [vmem:[%s2868_s18 + $0x18] sm:$0xff]  ;;  %p2536_p3 = pneg %p2535_p2 }
  0x74   : > { %2184 = vmatprep.subr.bf16.mxu0 %v2183_v8  ;;  %2208 = vmatprep.subr.bf16.mxu1 %v2207_v29  ;;  %v2215_v36 = vpack.c.bf16 %v398_v34, %v397_v33  ;;  %v315_v37 = vld [vmem:[%s2868_s18 + $0x20] sm:$0xff]  ;;  %v316_v38 = vld [vmem:[%s2868_s18 + $0x28] sm:$0xff]  ;;  %v317_v39 = vld [vmem:[%s2868_s18 + $0x30] sm:$0xff]  ;;  %p2542_p12 = por %p2541_p9, %p2540_p7 }
  0x75   : > { %2210 = vmatpush3.bf16.msra.mxu1 %v2207_v29  ;;  %v318_v40 = vld [vmem:[%s2868_s18 + $0x38] sm:$0xff]  ;;  %v319_v41 = vld [vmem:[%s2868_s18 + $0x40] sm:$0xff]  ;;  %v320_v42 = vld [vmem:[%s2868_s18 + $0x48] sm:$0xff] }
  0x76   : > { %2212 = vmatprep.subr.bf16.mxu1 %v2211_v32  ;;  %v321_v43 = vld [vmem:[%s2868_s18 + $0x50] sm:$0xff]  ;;  %v322_v44 = vld [vmem:[%s2868_s18 + $0x58] sm:$0xff]  ;;  %v323_v45 = vld [vmem:[%s2868_s18 + $0x60] sm:$0xff]  ;;  %p2543_p1 = pnand %p2542_p12, %p2536_p3 }
  0x77   : > { %2186 = vmatpush3.bf16.msra.mxu0 %v2183_v8  ;;  %v324_v46 = vld [vmem:[%s2868_s18 + $0x68] sm:$0xff]  ;;  %v325_v47 = vld [vmem:[%s2868_s18 + $0x70] sm:$0xff]  ;;  %v326_v48 = vld [vmem:[%s2868_s18 + $0x78] sm:$0xff] }
  0x78   : > { %2188 = vmatprep.subr.bf16.mxu0 %v2187_v12  ;;  %v327_v49 = vld [vmem:[%s2868_s18 + $0x80] sm:$0xff]  ;;  %v328_v50 = vld [vmem:[%s2868_s18 + $0x88] sm:$0xff]  ;;  %v329_v51 = vld [vmem:[%s2868_s18 + $0x90] sm:$0xff] }
  0x79   : > { %2214 = vmatpush3.bf16.msra.mxu1 %v2211_v32  ;;  %v330_v52 = vld [vmem:[%s2868_s18 + $0x98] sm:$0xff]  ;;  %v331_v53 = vld [vmem:[%s2868_s18 + $0xa0] sm:$0xff]  ;;  %v332_v54 = vld [vmem:[%s2868_s18 + $0xa8] sm:$0xff] }
  0x7a   : > { %2216 = vmatprep.subr.bf16.mxu1 %v2215_v36  ;;  %v333_v55 = vld [vmem:[%s2868_s18 + $0xb0] sm:$0xff]  ;;  %v334_v56 = vld [vmem:[%s2868_s18 + $0xb8] sm:$0xff]  ;;  %v335_v57 = vld [vmem:[%s2868_s18 + $0xc0] sm:$0xff] }
  0x7b   : > { %2190 = vmatpush3.bf16.msra.mxu0 %v2187_v12  ;;  %v336_v58 = vld [vmem:[%s2868_s18 + $0xc8] sm:$0xff]  ;;  %v337_v59 = vld [vmem:[%s2868_s18 + $0xd0] sm:$0xff]  ;;  %v338_v60 = vld [vmem:[%s2868_s18 + $0xd8] sm:$0xff] }
  0x7c   : > { %2192 = vmatprep.subr.bf16.mxu0 %v2191_v15  ;;  %v339_v61 = vld [vmem:[%s2868_s18 + $0xe0] sm:$0xff]  ;;  %v340_v62 = vld [vmem:[%s2868_s18 + $0xe8] sm:$0xff]  ;;  %v341_v63 = vld [vmem:[%s2868_s18 + $0xf0] sm:$0xff] }
  0x7d   : > { %2218 = vmatpush3.bf16.msra.mxu1 %v2215_v36  ;;  %v342_v0 = vld [vmem:[%s2868_s18 + $0xf8] sm:$0xff]  ;;  %v343_v1 = vld [vmem:[%s2868_s18 + $0x100] sm:$0xff]  ;;  %v344_v2 = vld [vmem:[%s2868_s18 + $0x108] sm:$0xff] }
  0x7e   : > { %v345_v3 = vld [vmem:[%s2868_s18 + $0x110] sm:$0xff]  ;;  %v346_v4 = vld [vmem:[%s2868_s18 + $0x118] sm:$0xff]  ;;  %v347_v5 = vld [vmem:[%s2868_s18 + $0x120] sm:$0xff] }
  0x7f   : > { %2194 = vmatpush3.bf16.msra.mxu0 %v2191_v15  ;;  %v348_v6 = vld [vmem:[%s2868_s18 + $0x128] sm:$0xff]  ;;  %v349_v7 = vld [vmem:[%s2868_s18 + $0x130] sm:$0xff]  ;;  %v350_v8 = vld [vmem:[%s2868_s18 + $0x138] sm:$0xff] }
  0x80   : > { %2196 = vmatprep.subr.bf16.mxu0 %v2195_v18  ;;  %v351_v9 = vld [vmem:[%s2868_s18 + $0x140] sm:$0xff]  ;;  %v352_v10 = vld [vmem:[%s2868_s18 + $0x148] sm:$0xff]  ;;  %v353_v11 = vld [vmem:[%s2868_s18 + $0x150] sm:$0xff] }
  0x81   : > { %v354_v12 = vld [vmem:[%s2868_s18 + $0x158] sm:$0xff]  ;;  %v355_v13 = vld [vmem:[%s2868_s18 + $0x160] sm:$0xff]  ;;  %v399_v14 = vld [vmem:[#allocation7 + $0x30] sm:$0xff] }
  0x82   : > { %v400_v15 = vld [vmem:[#allocation7 + $0x38] sm:$0xff]  ;;  %v356_v17 = vld [vmem:[%s2868_s18 + $0x168] sm:$0xff]  ;;  %v401_v19 = vld [vmem:[#allocation7 + $0x40] sm:$0xff] }
  0x83   : > { %2198 = vmatpush3.bf16.msra.mxu0 %v2195_v18  ;;  %v2219_v16 = vpack.c.bf16 %v400_v15, %v399_v14  ;;  %v357_v18 = vld [vmem:[%s2868_s18 + $0x170] sm:$0xff]  ;;  %v402_v20 = vld [vmem:[#allocation7 + $0x48] sm:$0xff]  ;;  %v358_v22 = vld [vmem:[%s2868_s18 + $0x178] sm:$0xff] }
  0x84   : > { %2200 = vmatprep.subr.bf16.mxu0 %v2199_v21  ;;  %v359_v23 = vld [vmem:[%s2868_s18 + $0x180] sm:$0xff]  ;;  %v404_v25 = vld [vmem:[#allocation7 + $0x58] sm:$0xff]  ;;  %v360_v27 = vld [vmem:[%s2868_s18 + $0x188] sm:$0xff] }
  0x85   : > { %2220 = vmatprep.subr.bf16.mxu1 %v2219_v16  ;;  %v405_v29 = vld [vmem:[#allocation7 + $0x60] sm:$0xff]  ;;  %v406_v30 = vld [vmem:[#allocation7 + $0x68] sm:$0xff]  ;;  %v362_v32 = vld [vmem:[%s2868_s18 + $0x198] sm:$0xff] }
  0x86   : > { %2222 = vmatpush3.bf16.msra.mxu1 %v2219_v16  ;;  %v363_v33 = vld [vmem:[%s2868_s18 + $0x1a0] sm:$0xff]  ;;  %v407_v34 = vld [vmem:[#allocation7 + $0x70] sm:$0xff] }
  0x87   : > { %2202 = vmatpush3.bf16.msra.mxu0 %v2199_v21  ;;  %v2223_v21 = vpack.c.bf16 %v402_v20, %v401_v19 }
  0x88   : > { %2204 = vmatprep.subr.bf16.mxu0 %v2203_v24 }
  0x89   : > { %2224 = vmatprep.subr.bf16.mxu1 %v2223_v21 }
  0x8a   : > { %2226 = vmatpush3.bf16.msra.mxu1 %v2223_v21 }
  0x8b   : > { %2206 = vmatpush3.bf16.msra.mxu0 %v2203_v24  ;;  %v403_v24 = vld [vmem:[#allocation7 + $0x50] sm:$0xff] }
  0x8c   : > { %v2227_v26 = vpack.c.bf16 %v404_v25, %v403_v24 }
  0x8e   : > { %1952 = vmatmul.mubr.f32.vlgmr.msra.gmra.mrb[0].mxu0 %v312_v28  ;;  %2228 = vmatprep.subr.bf16.mxu1 %v2227_v26  ;;  %v361_v28 = vld [vmem:[%s2868_s18 + $0x190] sm:$0xff] }
  0x8f   : > { %1954 = vmatprep.mubr.f32.mxu0 %v313_v31  ;;  %2230 = vmatpush3.bf16.msra.mxu1 %v2227_v26  ;;  %v2231_v31 = vpack.c.bf16 %v406_v30, %v405_v29 }
  0x91   : > { %2232 = vmatprep.subr.bf16.mxu1 %v2231_v31 }
  0x92   : > { %1955 = vmatmul.mubr.f32.gmra.mrb[2].mxu0 %v314_v35  ;;  %v408_v35 = vld [vmem:[#allocation7 + $0x78] sm:$0xff] }
  0x93   : > { %1957 = vmatprep.mubr.f32.mxu0 %v315_v37  ;;  %2234 = vmatpush3.bf16.msra.mxu1 %v2231_v31  ;;  %v2235_v36 = vpack.c.bf16 %v408_v35, %v407_v34  ;;  %v364_v37 = vld [vmem:[%s2868_s18 + $0x1a8] sm:$0xff] }
  0x95   : > { %2236 = vmatprep.subr.bf16.mxu1 %v2235_v36 }
  0x96   : > { %1958 = vmatmul.mubr.f32.gmra.mrb[4].mxu0 %v316_v38  ;;  %v365_v38 = vld [vmem:[%s2868_s18 + $0x1b0] sm:$0xff] }
  0x97   : > { %1960 = vmatprep.mubr.f32.mxu0 %v317_v39  ;;  %2238 = vmatpush3.bf16.msra.mxu1 %v2235_v36  ;;  %v366_v39 = vld [vmem:[%s2868_s18 + $0x1b8] sm:$0xff] }
  0x9a   : > { %1961 = vmatmul.mubr.f32.gmra.mrb[6].mxu0 %v318_v40  ;;  %v367_v40 = vld [vmem:[%s2868_s18 + $0x1c0] sm:$0xff] }
  0x9b   : > { %1963 = vmatprep.mubr.f32.mxu0 %v319_v41  ;;  %v368_v41 = vld [vmem:[%s2868_s18 + $0x1c8] sm:$0xff] }
  0x9e   : > { %1964 = vmatmul.mubr.f32.gmra.mrb[8].mxu0 %v320_v42  ;;  %v369_v42 = vld [vmem:[%s2868_s18 + $0x1d0] sm:$0xff] }
  0x9f   : > { %1966 = vmatprep.mubr.f32.mxu0 %v321_v43  ;;  %v370_v43 = vld [vmem:[%s2868_s18 + $0x1d8] sm:$0xff] }
  0xa2   : > { %1967 = vmatmul.mubr.f32.gmra.mrb[10].mxu0 %v322_v44  ;;  %v371_v44 = vld [vmem:[%s2868_s18 + $0x1e0] sm:$0xff] }
  0xa3   : > { %1969 = vmatprep.mubr.f32.mxu0 %v323_v45  ;;  %v372_v45 = vld [vmem:[%s2868_s18 + $0x1e8] sm:$0xff] }
  0xa6   : > { %1970 = vmatmul.mubr.f32.gmra.mrb[12].mxu0 %v324_v46  ;;  %v373_v46 = vld [vmem:[%s2868_s18 + $0x1f0] sm:$0xff] }
  0xa7   : > { %1972 = vmatprep.mubr.f32.mxu0 %v325_v47  ;;  %v374_v47 = vld [vmem:[%s2868_s18 + $0x1f8] sm:$0xff] }
  0xaa   : > { %1973 = vmatmul.mubr.f32.gmra.mrb[14].mxu0 %v326_v48  ;;  %v2945_v48 = vld [vmem:[%s3285_s2] ss:$0 sm:$0xff] }
  0xab   : > { %1975 = vmatprep.mubr.f32.mxu0 %v327_v49 }
  0xae   : > { %1976 = vmatmul.mubr.f32.gmra.mrb[16].mxu0 %v328_v50 }
  0xaf   : > { %1978 = vmatprep.mubr.f32.mxu0 %v329_v51 }
  0xb2   : > { %1979 = vmatmul.mubr.f32.gmra.mrb[18].mxu0 %v330_v52 }
  0xb3   : > { %1981 = vmatprep.mubr.f32.mxu0 %v331_v53 }
  0xb6   : > { %1982 = vmatmul.mubr.f32.gmra.mrb[20].mxu0 %v332_v54 }
  0xb7   : > { %1984 = vmatprep.mubr.f32.mxu0 %v333_v55 }
  0xba   : > { %1985 = vmatmul.mubr.f32.gmra.mrb[22].mxu0 %v334_v56 }
  0xbb   : > { %1987 = vmatprep.mubr.f32.mxu0 %v335_v57 }
  0xbe   : > { %1988 = vmatmul.mubr.f32.gmra.mrb[24].mxu0 %v336_v58 }
  0xbf   : > { %1990 = vmatprep.mubr.f32.mxu0 %v337_v59 }
  0xc2   : > { %1991 = vmatmul.mubr.f32.gmra.mrb[26].mxu0 %v338_v60 }
  0xc3   : > { %1993 = vmatprep.mubr.f32.mxu0 %v339_v61  ;;  %v2956_v61 = vld [vmem:[%s3286_s3] ss:$0 sm:$0xff] }
  0xc6   : > { %1994 = vmatmul.mubr.f32.gmra.mrb[28].mxu0 %v340_v62 }
  0xc7   : > { %1996 = vmatprep.mubr.f32.mxu0 %v341_v63 }
  0xca   : > { %1997 = vmatmul.mubr.f32.gmra.mrb[30].mxu0 %v342_v0 }
  0xcb   : > { %1999 = vmatprep.mubr.f32.mxu0 %v343_v1 }
  0xce   : > { %2000 = vmatmul.mubr.f32.gmra.mrb[32].mxu0 %v344_v2 }
  0xcf   : > { %2002 = vmatprep.mubr.f32.mxu0 %v345_v3 }
  0xd2   : > { %2003 = vmatmul.mubr.f32.gmra.mrb[34].mxu0 %v346_v4 }
  0xd3   : > { %2005 = vmatprep.mubr.f32.mxu0 %v347_v5 }
  0xd6   : > { %2006 = vmatmul.mubr.f32.gmra.mrb[36].mxu0 %v348_v6 }
  0xd7   : > { %2008 = vmatprep.mubr.f32.mxu0 %v349_v7 }
  0xda   : > { %2009 = vmatmul.mubr.f32.gmra.mrb[38].mxu0 %v350_v8 }
  0xdb   : > { %2011 = vmatprep.mubr.f32.mxu0 %v351_v9 }
  0xde   : > { %2012 = vmatmul.mubr.f32.gmra.mrb[40].mxu0 %v352_v10 }
  0xdf   : > { %2014 = vmatprep.mubr.f32.mxu0 %v353_v11 }
  0xe2   : > { %2015 = vmatmul.mubr.f32.gmra.mrb[42].mxu0 %v354_v12 }
  0xe3   : > { %2017 = vmatprep.mubr.f32.mxu0 %v355_v13 }
  0xe6   : > { %2018 = vmatmul.mubr.f32.gmra.mrb[44].mxu0 %v356_v17 }
  0xe7   : > { %2020 = vmatprep.mubr.f32.mxu0 %v357_v18 }
  0xea   : > { %2021 = vmatmul.mubr.f32.gmra.mrb[46].mxu0 %v358_v22 }
  0xeb   : > { %2023 = vmatprep.mubr.f32.mxu0 %v359_v23 }
  0xee   : > { %2024 = vmatmul.mubr.f32.gmra.mrb[48].mxu0 %v360_v27 }
  0xef   : > { %2026 = vmatprep.mubr.f32.mxu0 %v361_v28 }
  0xf2   : > { %2027 = vmatmul.mubr.f32.gmra.mrb[50].mxu0 %v362_v32 }
  0xf3   : > { %2029 = vmatprep.mubr.f32.mxu0 %v363_v33 }
  0xf6   : > { %2030 = vmatmul.mubr.f32.gmra.mrb[52].mxu0 %v364_v37 }
  0xf7   : > { %2032 = vmatprep.mubr.f32.mxu0 %v365_v38 }
  0xfa   : > { %2033 = vmatmul.mubr.f32.gmra.mrb[54].mxu0 %v366_v39 }
  0xfb   : > { %2035 = vmatprep.mubr.f32.mxu0 %v367_v40 }
  0xfe   : > { %2036 = vmatmul.mubr.f32.gmra.mrb[56].mxu0 %v368_v41 }
  0xff   : > { %2038 = vmatprep.mubr.f32.mxu0 %v369_v42 }
 0x102   : > { %2039 = vmatmul.mubr.f32.gmra.mrb[58].mxu0 %v370_v43 }
 0x103   : > { %2041 = vmatprep.mubr.f32.mxu0 %v371_v44 }
 0x106   : > { %2042 = vmatmul.mubr.f32.gmra.mrb[60].mxu0 %v372_v45 }
 0x107   : > { %2044 = vmatprep.mubr.f32.mxu0 %v373_v46 }
 0x10a   : > { %2045 = vmatmul.mubr.f32.gmra.mrb[62].mxu0 %v374_v47 }
 0x161   : > { %v1953_v49 = vpop.f32.mrb[0].mxu0 }
 0x162   : > { %v487_v50 = vadd.f32 %v1953_v49, %v2945_v48  ;;  %v481_v51 = vpop.f32.mrb[1].mxu0 }
 0x163   : > { %v482_v52 = vadd.f32 %v2945_v48, %v481_v51 }
 0x164   : > { %2317 = vtanh.f32 %v487_v50 }
 0x165   : > { %2319 = vtanh.f32 %v482_v52  ;;  %v1956_v53 = vpop.f32.mrb[2].mxu0 }
 0x166   : > { %v497_v54 = vadd.f32 %v1956_v53, %v2945_v48  ;;  %v491_v55 = vpop.f32.mrb[3].mxu0 }
 0x167   : > { %v492_v56 = vadd.f32 %v2945_v48, %v491_v55 }
 0x168   : > { %2321 = vtanh.f32 %v497_v54 }
 0x169   : > { %2323 = vtanh.f32 %v492_v56  ;;  %v1959_v57 = vpop.f32.mrb[4].mxu0 }
 0x16a   : > { %v507_v58 = vadd.f32 %v1959_v57, %v2945_v48  ;;  %v501_v59 = vpop.f32.mrb[5].mxu0 }
 0x16b   : > { %v502_v60 = vadd.f32 %v2945_v48, %v501_v59 }
 0x16c   : > { %2325 = vtanh.f32 %v507_v58 }
 0x16d   : > { %2327 = vtanh.f32 %v502_v60  ;;  %v1962_v62 = vpop.f32.mrb[6].mxu0 }
 0x16e   : > { %v2318_v63 = vpop.eup %2317  ;;  %v517_v0 = vadd.f32 %v1962_v62, %v2945_v48  ;;  %v511_v1 = vpop.f32.mrb[7].mxu0 }
 0x16f   : > { %v2320_v2 = vpop.eup %2319  ;;  %v512_v3 = vadd.f32 %v2945_v48, %v511_v1  ;;  %v871_v4 = vmul.f32 %v2318_v63, %v2956_v61 }
 0x170   : > { %2329 = vtanh.f32 %v517_v0  ;;  %v870_v5 = vmul.f32 %v2320_v2, %v2956_v61 }
 0x171   : > { %2331 = vtanh.f32 %v512_v3  ;;  %v1965_v6 = vpop.f32.mrb[8].mxu0  ;;  %v1009_v7 = vmul.f32 %v2318_v63, %v871_v4 }
 0x172   : > { %v2322_v8 = vpop.eup %2321  ;;  %v527_v9 = vadd.f32 %v1965_v6, %v2945_v48  ;;  %v521_v10 = vpop.f32.mrb[9].mxu0  ;;  %v934_v11 = vadd.f32 %v871_v4, %v870_v5  ;;  %v1008_v12 = vmul.f32 %v2320_v2, %v870_v5 }
 0x173   : > { %v2324_v13 = vpop.eup %2323  ;;  %v522_v14 = vadd.f32 %v2945_v48, %v521_v10  ;;  %v873_v15 = vmul.f32 %v2322_v8, %v2956_v61  ;;  %v1073_v19 = vsub.f32 %v2956_v61, %v1009_v7 }
 0x174   : > { %2333 = vtanh.f32 %v527_v9  ;;  %v872_v16 = vmul.f32 %v2324_v13, %v2956_v61  ;;  %v1072_v17 = vsub.f32 %v2956_v61, %v1008_v12 }
 0x175   : > { %2335 = vtanh.f32 %v522_v14  ;;  %v1968_v18 = vpop.f32.mrb[10].mxu0  ;;  %v1011_v20 = vmul.f32 %v2322_v8, %v873_v15 }
 0x176   : > { %v2326_v21 = vpop.eup %2325  ;;  %v537_v22 = vadd.f32 %v1968_v18, %v2945_v48  ;;  %v531_v23 = vpop.f32.mrb[11].mxu0  ;;  %v935_v24 = vadd.f32 %v934_v11, %v872_v16  ;;  %2079 = vmatprep.mubr.f32.mxu1 %v1072_v17  ;;  %v1010_v25 = vmul.f32 %v2324_v13, %v872_v16 }
 0x177   : > { %v2328_v26 = vpop.eup %2327  ;;  %v532_v27 = vadd.f32 %v2945_v48, %v531_v23  ;;  %2080 = vmatmul.mubr.f32.vlgmr.msra.gmra.mrb[0].mxu1 %v1073_v19  ;;  %v875_v28 = vmul.f32 %v2326_v21, %v2956_v61  ;;  %v1075_v33 = vsub.f32 %v2956_v61, %v1011_v20 }
 0x178   : > { %2337 = vtanh.f32 %v537_v22  ;;  %v1074_v29 = vsub.f32 %v2956_v61, %v1010_v25  ;;  %v936_v30 = vadd.f32 %v935_v24, %v873_v15  ;;  %v874_v31 = vmul.f32 %v2328_v26, %v2956_v61 }
 0x179   : > { %2339 = vtanh.f32 %v532_v27  ;;  %v1971_v32 = vpop.f32.mrb[12].mxu0  ;;  %v1013_v34 = vmul.f32 %v2326_v21, %v875_v28 }
 0x17a   : > { %v2330_v35 = vpop.eup %2329  ;;  %v547_v36 = vadd.f32 %v1971_v32, %v2945_v48  ;;  %v541_v37 = vpop.f32.mrb[13].mxu0  ;;  %2082 = vmatprep.mubr.f32.mxu1 %v1074_v29  ;;  %v937_v38 = vadd.f32 %v936_v30, %v874_v31  ;;  %v1012_v39 = vmul.f32 %v2328_v26, %v874_v31 }
 0x17b   : > { %v2332_v40 = vpop.eup %2331  ;;  %v542_v41 = vadd.f32 %v2945_v48, %v541_v37  ;;  %2083 = vmatmul.mubr.f32.gmra.mrb[2].mxu1 %v1075_v33  ;;  %v877_v42 = vmul.f32 %v2330_v35, %v2956_v61  ;;  %v1077_v47 = vsub.f32 %v2956_v61, %v1013_v34 }
 0x17c   : > { %2341 = vtanh.f32 %v547_v36  ;;  %v1076_v43 = vsub.f32 %v2956_v61, %v1012_v39  ;;  %v938_v44 = vadd.f32 %v937_v38, %v875_v28  ;;  %v876_v45 = vmul.f32 %v2332_v40, %v2956_v61 }
 0x17d   : > { %2343 = vtanh.f32 %v542_v41  ;;  %v1974_v46 = vpop.f32.mrb[14].mxu0  ;;  %v1015_v49 = vmul.f32 %v2330_v35, %v877_v42 }
 0x17e   : > { %v2334_v50 = vpop.eup %2333  ;;  %v557_v51 = vadd.f32 %v1974_v46, %v2945_v48  ;;  %v551_v52 = vpop.f32.mrb[15].mxu0  ;;  %2085 = vmatprep.mubr.f32.mxu1 %v1076_v43  ;;  %v939_v53 = vadd.f32 %v938_v44, %v876_v45  ;;  %v1014_v54 = vmul.f32 %v2332_v40, %v876_v45 }
 0x17f   : > { %v2336_v55 = vpop.eup %2335  ;;  %v552_v56 = vadd.f32 %v2945_v48, %v551_v52  ;;  %2086 = vmatmul.mubr.f32.gmra.mrb[4].mxu1 %v1077_v47  ;;  %v879_v57 = vmul.f32 %v2334_v50, %v2956_v61  ;;  %v1079_v63 = vsub.f32 %v2956_v61, %v1015_v49 }
 0x180   : > { %2345 = vtanh.f32 %v557_v51  ;;  %v1078_v58 = vsub.f32 %v2956_v61, %v1014_v54  ;;  %v940_v59 = vadd.f32 %v939_v53, %v877_v42  ;;  %v878_v60 = vmul.f32 %v2336_v55, %v2956_v61 }
 0x181   : > { %2347 = vtanh.f32 %v552_v56  ;;  %v1977_v62 = vpop.f32.mrb[16].mxu0  ;;  %v1017_v0 = vmul.f32 %v2334_v50, %v879_v57 }
 0x182   : > { %v2338_v1 = vpop.eup %2337  ;;  %v567_v2 = vadd.f32 %v1977_v62, %v2945_v48  ;;  %v561_v3 = vpop.f32.mrb[17].mxu0  ;;  %2088 = vmatprep.mubr.f32.mxu1 %v1078_v58  ;;  %v941_v4 = vadd.f32 %v940_v59, %v878_v60  ;;  %v1016_v5 = vmul.f32 %v2336_v55, %v878_v60 }
 0x183   : > { %v2340_v6 = vpop.eup %2339  ;;  %v562_v7 = vadd.f32 %v2945_v48, %v561_v3  ;;  %2089 = vmatmul.mubr.f32.gmra.mrb[6].mxu1 %v1079_v63  ;;  %v881_v8 = vmul.f32 %v2338_v1, %v2956_v61  ;;  %v1081_v13 = vsub.f32 %v2956_v61, %v1017_v0 }
 0x184   : > { %2349 = vtanh.f32 %v567_v2  ;;  %v1080_v9 = vsub.f32 %v2956_v61, %v1016_v5  ;;  %v942_v10 = vadd.f32 %v941_v4, %v879_v57  ;;  %v880_v11 = vmul.f32 %v2340_v6, %v2956_v61 }
 0x185   : > { %2351 = vtanh.f32 %v562_v7  ;;  %v1980_v12 = vpop.f32.mrb[18].mxu0  ;;  %v1019_v14 = vmul.f32 %v2338_v1, %v881_v8 }
 0x186   : > { %v2342_v15 = vpop.eup %2341  ;;  %v577_v16 = vadd.f32 %v1980_v12, %v2945_v48  ;;  %v571_v17 = vpop.f32.mrb[19].mxu0  ;;  %2091 = vmatprep.mubr.f32.mxu1 %v1080_v9  ;;  %v943_v18 = vadd.f32 %v942_v10, %v880_v11  ;;  %v1018_v19 = vmul.f32 %v2340_v6, %v880_v11 }
 0x187   : > { %v2344_v20 = vpop.eup %2343  ;;  %v572_v21 = vadd.f32 %v2945_v48, %v571_v17  ;;  %2092 = vmatmul.mubr.f32.gmra.mrb[8].mxu1 %v1081_v13  ;;  %v883_v22 = vmul.f32 %v2342_v15, %v2956_v61  ;;  %v1083_v27 = vsub.f32 %v2956_v61, %v1019_v14 }
 0x188   : > { %2353 = vtanh.f32 %v577_v16  ;;  %v1082_v23 = vsub.f32 %v2956_v61, %v1018_v19  ;;  %v944_v24 = vadd.f32 %v943_v18, %v881_v8  ;;  %v882_v25 = vmul.f32 %v2344_v20, %v2956_v61 }
 0x189   : > { %2355 = vtanh.f32 %v572_v21  ;;  %v1983_v26 = vpop.f32.mrb[20].mxu0  ;;  %v1021_v28 = vmul.f32 %v2342_v15, %v883_v22 }
 0x18a   : > { %v2346_v29 = vpop.eup %2345  ;;  %v587_v30 = vadd.f32 %v1983_v26, %v2945_v48  ;;  %v581_v31 = vpop.f32.mrb[21].mxu0  ;;  %2094 = vmatprep.mubr.f32.mxu1 %v1082_v23  ;;  %v945_v32 = vadd.f32 %v944_v24, %v882_v25  ;;  %v1020_v33 = vmul.f32 %v2344_v20, %v882_v25 }
 0x18b   : > { %v2348_v34 = vpop.eup %2347  ;;  %v582_v35 = vadd.f32 %v2945_v48, %v581_v31  ;;  %2095 = vmatmul.mubr.f32.gmra.mrb[10].mxu1 %v1083_v27  ;;  %v885_v36 = vmul.f32 %v2346_v29, %v2956_v61  ;;  %v1085_v41 = vsub.f32 %v2956_v61, %v1021_v28 }
 0x18c   : > { %2357 = vtanh.f32 %v587_v30  ;;  %v1084_v37 = vsub.f32 %v2956_v61, %v1020_v33  ;;  %v946_v38 = vadd.f32 %v945_v32, %v883_v22  ;;  %v884_v39 = vmul.f32 %v2348_v34, %v2956_v61 }
 0x18d   : > { %2359 = vtanh.f32 %v582_v35  ;;  %v1986_v40 = vpop.f32.mrb[22].mxu0  ;;  %v1023_v42 = vmul.f32 %v2346_v29, %v885_v36 }
 0x18e   : > { %v2350_v43 = vpop.eup %2349  ;;  %v597_v44 = vadd.f32 %v1986_v40, %v2945_v48  ;;  %v591_v45 = vpop.f32.mrb[23].mxu0  ;;  %2097 = vmatprep.mubr.f32.mxu1 %v1084_v37  ;;  %v947_v46 = vadd.f32 %v946_v38, %v884_v39  ;;  %v1022_v47 = vmul.f32 %v2348_v34, %v884_v39 }
 0x18f   : > { %v2352_v49 = vpop.eup %2351  ;;  %v592_v50 = vadd.f32 %v2945_v48, %v591_v45  ;;  %2098 = vmatmul.mubr.f32.gmra.mrb[12].mxu1 %v1085_v41  ;;  %v887_v51 = vmul.f32 %v2350_v43, %v2956_v61  ;;  %v1087_v56 = vsub.f32 %v2956_v61, %v1023_v42 }
 0x190   : > { %2361 = vtanh.f32 %v597_v44  ;;  %v1086_v52 = vsub.f32 %v2956_v61, %v1022_v47  ;;  %v948_v53 = vadd.f32 %v947_v46, %v885_v36  ;;  %v886_v54 = vmul.f32 %v2352_v49, %v2956_v61 }
 0x191   : > { %2363 = vtanh.f32 %v592_v50  ;;  %v1989_v55 = vpop.f32.mrb[24].mxu0  ;;  %v1025_v57 = vmul.f32 %v2350_v43, %v887_v51 }
 0x192   : > { %v2354_v58 = vpop.eup %2353  ;;  %v607_v59 = vadd.f32 %v1989_v55, %v2945_v48  ;;  %v601_v60 = vpop.f32.mrb[25].mxu0  ;;  %2100 = vmatprep.mubr.f32.mxu1 %v1086_v52  ;;  %v949_v62 = vadd.f32 %v948_v53, %v886_v54  ;;  %v1024_v63 = vmul.f32 %v2352_v49, %v886_v54 }
 0x193   : > { %v2356_v0 = vpop.eup %2355  ;;  %v602_v1 = vadd.f32 %v2945_v48, %v601_v60  ;;  %2101 = vmatmul.mubr.f32.gmra.mrb[14].mxu1 %v1087_v56  ;;  %v889_v2 = vmul.f32 %v2354_v58, %v2956_v61  ;;  %v1089_v7 = vsub.f32 %v2956_v61, %v1025_v57 }
 0x194   : > { %2365 = vtanh.f32 %v607_v59  ;;  %v1088_v3 = vsub.f32 %v2956_v61, %v1024_v63  ;;  %v950_v4 = vadd.f32 %v949_v62, %v887_v51  ;;  %v888_v5 = vmul.f32 %v2356_v0, %v2956_v61 }
 0x195   : > { %2367 = vtanh.f32 %v602_v1  ;;  %v1992_v6 = vpop.f32.mrb[26].mxu0  ;;  %v1027_v8 = vmul.f32 %v2354_v58, %v889_v2 }
 0x196   : > { %v2358_v9 = vpop.eup %2357  ;;  %v617_v10 = vadd.f32 %v1992_v6, %v2945_v48  ;;  %v611_v11 = vpop.f32.mrb[27].mxu0  ;;  %2103 = vmatprep.mubr.f32.mxu1 %v1088_v3  ;;  %v951_v12 = vadd.f32 %v950_v4, %v888_v5  ;;  %v1026_v13 = vmul.f32 %v2356_v0, %v888_v5 }
 0x197   : > { %v2360_v14 = vpop.eup %2359  ;;  %v612_v15 = vadd.f32 %v2945_v48, %v611_v11  ;;  %2104 = vmatmul.mubr.f32.gmra.mrb[16].mxu1 %v1089_v7  ;;  %v891_v16 = vmul.f32 %v2358_v9, %v2956_v61  ;;  %v1091_v21 = vsub.f32 %v2956_v61, %v1027_v8 }
 0x198   : > { %2369 = vtanh.f32 %v617_v10  ;;  %v1090_v17 = vsub.f32 %v2956_v61, %v1026_v13  ;;  %v952_v18 = vadd.f32 %v951_v12, %v889_v2  ;;  %v890_v19 = vmul.f32 %v2360_v14, %v2956_v61 }
 0x199   : > { %2371 = vtanh.f32 %v612_v15  ;;  %v1995_v20 = vpop.f32.mrb[28].mxu0  ;;  %v1029_v22 = vmul.f32 %v2358_v9, %v891_v16 }
 0x19a   : > { %v2362_v23 = vpop.eup %2361  ;;  %v627_v24 = vadd.f32 %v1995_v20, %v2945_v48  ;;  %v621_v25 = vpop.f32.mrb[29].mxu0  ;;  %2106 = vmatprep.mubr.f32.mxu1 %v1090_v17  ;;  %v953_v26 = vadd.f32 %v952_v18, %v890_v19  ;;  %v1028_v27 = vmul.f32 %v2360_v14, %v890_v19 }
 0x19b   : > { %v2364_v28 = vpop.eup %2363  ;;  %v622_v29 = vadd.f32 %v2945_v48, %v621_v25  ;;  %2107 = vmatmul.mubr.f32.gmra.mrb[18].mxu1 %v1091_v21  ;;  %v893_v30 = vmul.f32 %v2362_v23, %v2956_v61  ;;  %v1093_v35 = vsub.f32 %v2956_v61, %v1029_v22 }
 0x19c   : > { %2373 = vtanh.f32 %v627_v24  ;;  %v1092_v31 = vsub.f32 %v2956_v61, %v1028_v27  ;;  %v954_v32 = vadd.f32 %v953_v26, %v891_v16  ;;  %v892_v33 = vmul.f32 %v2364_v28, %v2956_v61 }
 0x19d   : > { %2375 = vtanh.f32 %v622_v29  ;;  %v1998_v34 = vpop.f32.mrb[30].mxu0  ;;  %v1031_v36 = vmul.f32 %v2362_v23, %v893_v30 }
 0x19e   : > { %v2366_v37 = vpop.eup %2365  ;;  %v637_v38 = vadd.f32 %v1998_v34, %v2945_v48  ;;  %v631_v39 = vpop.f32.mrb[31].mxu0  ;;  %2109 = vmatprep.mubr.f32.mxu1 %v1092_v31  ;;  %v955_v40 = vadd.f32 %v954_v32, %v892_v33  ;;  %v1030_v41 = vmul.f32 %v2364_v28, %v892_v33 }
 0x19f   : > { %v2368_v42 = vpop.eup %2367  ;;  %v632_v43 = vadd.f32 %v2945_v48, %v631_v39  ;;  %2110 = vmatmul.mubr.f32.gmra.mrb[20].mxu1 %v1093_v35  ;;  %v895_v44 = vmul.f32 %v2366_v37, %v2956_v61  ;;  %v1095_v50 = vsub.f32 %v2956_v61, %v1031_v36 }
 0x1a0   : > { %2377 = vtanh.f32 %v637_v38  ;;  %v1094_v45 = vsub.f32 %v2956_v61, %v1030_v41  ;;  %v956_v46 = vadd.f32 %v955_v40, %v893_v30  ;;  %v894_v47 = vmul.f32 %v2368_v42, %v2956_v61 }
 0x1a1   : > { %2379 = vtanh.f32 %v632_v43  ;;  %v2001_v49 = vpop.f32.mrb[32].mxu0  ;;  %v1033_v51 = vmul.f32 %v2366_v37, %v895_v44 }
 0x1a2   : > { %v2370_v52 = vpop.eup %2369  ;;  %v647_v53 = vadd.f32 %v2001_v49, %v2945_v48  ;;  %v641_v54 = vpop.f32.mrb[33].mxu0  ;;  %2112 = vmatprep.mubr.f32.mxu1 %v1094_v45  ;;  %v957_v55 = vadd.f32 %v956_v46, %v894_v47  ;;  %v1032_v56 = vmul.f32 %v2368_v42, %v894_v47 }
 0x1a3   : > { %v2372_v57 = vpop.eup %2371  ;;  %v642_v58 = vadd.f32 %v2945_v48, %v641_v54  ;;  %2113 = vmatmul.mubr.f32.gmra.mrb[22].mxu1 %v1095_v50  ;;  %v897_v59 = vmul.f32 %v2370_v52, %v2956_v61  ;;  %v1097_v1 = vsub.f32 %v2956_v61, %v1033_v51 }
 0x1a4   : > { %2381 = vtanh.f32 %v647_v53  ;;  %v1096_v60 = vsub.f32 %v2956_v61, %v1032_v56  ;;  %v958_v62 = vadd.f32 %v957_v55, %v895_v44  ;;  %v896_v63 = vmul.f32 %v2372_v57, %v2956_v61 }
 0x1a5   : > { %2383 = vtanh.f32 %v642_v58  ;;  %v2004_v0 = vpop.f32.mrb[34].mxu0  ;;  %v1035_v2 = vmul.f32 %v2370_v52, %v897_v59 }
 0x1a6   : > { %v2374_v3 = vpop.eup %2373  ;;  %v657_v4 = vadd.f32 %v2004_v0, %v2945_v48  ;;  %v651_v5 = vpop.f32.mrb[35].mxu0  ;;  %2115 = vmatprep.mubr.f32.mxu1 %v1096_v60  ;;  %v959_v6 = vadd.f32 %v958_v62, %v896_v63  ;;  %v1034_v7 = vmul.f32 %v2372_v57, %v896_v63 }
 0x1a7   : > { %v2376_v8 = vpop.eup %2375  ;;  %v652_v9 = vadd.f32 %v2945_v48, %v651_v5  ;;  %2116 = vmatmul.mubr.f32.gmra.mrb[24].mxu1 %v1097_v1  ;;  %v899_v10 = vmul.f32 %v2374_v3, %v2956_v61  ;;  %v1099_v15 = vsub.f32 %v2956_v61, %v1035_v2 }
 0x1a8   : > { %2385 = vtanh.f32 %v657_v4  ;;  %v1098_v11 = vsub.f32 %v2956_v61, %v1034_v7  ;;  %v960_v12 = vadd.f32 %v959_v6, %v897_v59  ;;  %v898_v13 = vmul.f32 %v2376_v8, %v2956_v61 }
 0x1a9   : > { %2387 = vtanh.f32 %v652_v9  ;;  %v2007_v14 = vpop.f32.mrb[36].mxu0  ;;  %v1037_v16 = vmul.f32 %v2374_v3, %v899_v10 }
 0x1aa   : > { %v2378_v17 = vpop.eup %2377  ;;  %v667_v18 = vadd.f32 %v2007_v14, %v2945_v48  ;;  %v661_v19 = vpop.f32.mrb[37].mxu0  ;;  %2118 = vmatprep.mubr.f32.mxu1 %v1098_v11  ;;  %v961_v20 = vadd.f32 %v960_v12, %v898_v13  ;;  %v1036_v21 = vmul.f32 %v2376_v8, %v898_v13 }
 0x1ab   : > { %v2380_v22 = vpop.eup %2379  ;;  %v662_v23 = vadd.f32 %v2945_v48, %v661_v19  ;;  %2119 = vmatmul.mubr.f32.gmra.mrb[26].mxu1 %v1099_v15  ;;  %v901_v24 = vmul.f32 %v2378_v17, %v2956_v61  ;;  %v1101_v29 = vsub.f32 %v2956_v61, %v1037_v16 }
 0x1ac   : > { %2389 = vtanh.f32 %v667_v18  ;;  %v1100_v25 = vsub.f32 %v2956_v61, %v1036_v21  ;;  %v962_v26 = vadd.f32 %v961_v20, %v899_v10  ;;  %v900_v27 = vmul.f32 %v2380_v22, %v2956_v61 }
 0x1ad   : > { %2391 = vtanh.f32 %v662_v23  ;;  %v2010_v28 = vpop.f32.mrb[38].mxu0  ;;  %v1039_v30 = vmul.f32 %v2378_v17, %v901_v24 }
 0x1ae   : > { %v2382_v31 = vpop.eup %2381  ;;  %v677_v32 = vadd.f32 %v2010_v28, %v2945_v48  ;;  %v671_v33 = vpop.f32.mrb[39].mxu0  ;;  %2121 = vmatprep.mubr.f32.mxu1 %v1100_v25  ;;  %v963_v34 = vadd.f32 %v962_v26, %v900_v27  ;;  %v1038_v35 = vmul.f32 %v2380_v22, %v900_v27 }
 0x1af   : > { %v2384_v36 = vpop.eup %2383  ;;  %v672_v37 = vadd.f32 %v2945_v48, %v671_v33  ;;  %2122 = vmatmul.mubr.f32.gmra.mrb[28].mxu1 %v1101_v29  ;;  %v903_v38 = vmul.f32 %v2382_v31, %v2956_v61  ;;  %v1103_v43 = vsub.f32 %v2956_v61, %v1039_v30 }
 0x1b0   : > { %2393 = vtanh.f32 %v677_v32  ;;  %v1102_v39 = vsub.f32 %v2956_v61, %v1038_v35  ;;  %v964_v40 = vadd.f32 %v963_v34, %v901_v24  ;;  %v902_v41 = vmul.f32 %v2384_v36, %v2956_v61 }
 0x1b1   : > { %2395 = vtanh.f32 %v672_v37  ;;  %v2013_v42 = vpop.f32.mrb[40].mxu0  ;;  %v1041_v44 = vmul.f32 %v2382_v31, %v903_v38 }
 0x1b2   : > { %v2386_v45 = vpop.eup %2385  ;;  %v687_v46 = vadd.f32 %v2013_v42, %v2945_v48  ;;  %v681_v47 = vpop.f32.mrb[41].mxu0  ;;  %2124 = vmatprep.mubr.f32.mxu1 %v1102_v39  ;;  %v965_v49 = vadd.f32 %v964_v40, %v902_v41  ;;  %v1040_v50 = vmul.f32 %v2384_v36, %v902_v41 }
 0x1b3   : > { %v2388_v51 = vpop.eup %2387  ;;  %v682_v52 = vadd.f32 %v2945_v48, %v681_v47  ;;  %2125 = vmatmul.mubr.f32.gmra.mrb[30].mxu1 %v1103_v43  ;;  %v905_v53 = vmul.f32 %v2386_v45, %v2956_v61  ;;  %v1105_v58 = vsub.f32 %v2956_v61, %v1041_v44 }
 0x1b4   : > { %2397 = vtanh.f32 %v687_v46  ;;  %v1104_v54 = vsub.f32 %v2956_v61, %v1040_v50  ;;  %v966_v55 = vadd.f32 %v965_v49, %v903_v38  ;;  %v904_v56 = vmul.f32 %v2388_v51, %v2956_v61 }
 0x1b5   : > { %2399 = vtanh.f32 %v682_v52  ;;  %v2016_v57 = vpop.f32.mrb[42].mxu0  ;;  %v1043_v59 = vmul.f32 %v2386_v45, %v905_v53 }
 0x1b6   : > { %v2390_v60 = vpop.eup %2389  ;;  %v697_v62 = vadd.f32 %v2016_v57, %v2945_v48  ;;  %v691_v63 = vpop.f32.mrb[43].mxu0  ;;  %2127 = vmatprep.mubr.f32.mxu1 %v1104_v54  ;;  %v967_v0 = vadd.f32 %v966_v55, %v904_v56  ;;  %v1042_v1 = vmul.f32 %v2388_v51, %v904_v56 }
 0x1b7   : > { %v2392_v2 = vpop.eup %2391  ;;  %v692_v3 = vadd.f32 %v2945_v48, %v691_v63  ;;  %2128 = vmatmul.mubr.f32.gmra.mrb[32].mxu1 %v1105_v58  ;;  %v907_v4 = vmul.f32 %v2390_v60, %v2956_v61  ;;  %v1107_v9 = vsub.f32 %v2956_v61, %v1043_v59 }
 0x1b8   : > { %2401 = vtanh.f32 %v697_v62  ;;  %v1106_v5 = vsub.f32 %v2956_v61, %v1042_v1  ;;  %v968_v6 = vadd.f32 %v967_v0, %v905_v53  ;;  %v906_v7 = vmul.f32 %v2392_v2, %v2956_v61 }
 0x1b9   : > { %2403 = vtanh.f32 %v692_v3  ;;  %v2019_v8 = vpop.f32.mrb[44].mxu0  ;;  %v1045_v10 = vmul.f32 %v2390_v60, %v907_v4 }
 0x1ba   : > { %v2394_v11 = vpop.eup %2393  ;;  %v707_v12 = vadd.f32 %v2019_v8, %v2945_v48  ;;  %v701_v13 = vpop.f32.mrb[45].mxu0  ;;  %2130 = vmatprep.mubr.f32.mxu1 %v1106_v5  ;;  %v969_v14 = vadd.f32 %v968_v6, %v906_v7  ;;  %v1044_v15 = vmul.f32 %v2392_v2, %v906_v7 }
 0x1bb   : > { %v2396_v16 = vpop.eup %2395  ;;  %v702_v17 = vadd.f32 %v2945_v48, %v701_v13  ;;  %2131 = vmatmul.mubr.f32.gmra.mrb[34].mxu1 %v1107_v9  ;;  %v909_v18 = vmul.f32 %v2394_v11, %v2956_v61  ;;  %v1109_v23 = vsub.f32 %v2956_v61, %v1045_v10 }
 0x1bc   : > { %2405 = vtanh.f32 %v707_v12  ;;  %v1108_v19 = vsub.f32 %v2956_v61, %v1044_v15  ;;  %v970_v20 = vadd.f32 %v969_v14, %v907_v4  ;;  %v908_v21 = vmul.f32 %v2396_v16, %v2956_v61 }
 0x1bd   : > { %2407 = vtanh.f32 %v702_v17  ;;  %v2022_v22 = vpop.f32.mrb[46].mxu0  ;;  %v1047_v24 = vmul.f32 %v2394_v11, %v909_v18 }
 0x1be   : > { %v2398_v25 = vpop.eup %2397  ;;  %v717_v26 = vadd.f32 %v2022_v22, %v2945_v48  ;;  %v711_v27 = vpop.f32.mrb[47].mxu0  ;;  %2133 = vmatprep.mubr.f32.mxu1 %v1108_v19  ;;  %v971_v28 = vadd.f32 %v970_v20, %v908_v21  ;;  %v1046_v29 = vmul.f32 %v2396_v16, %v908_v21 }
 0x1bf   : > { %v2400_v30 = vpop.eup %2399  ;;  %v712_v31 = vadd.f32 %v2945_v48, %v711_v27  ;;  %2134 = vmatmul.mubr.f32.gmra.mrb[36].mxu1 %v1109_v23  ;;  %v911_v32 = vmul.f32 %v2398_v25, %v2956_v61  ;;  %v1111_v37 = vsub.f32 %v2956_v61, %v1047_v24 }
 0x1c0   : > { %2409 = vtanh.f32 %v717_v26  ;;  %v1110_v33 = vsub.f32 %v2956_v61, %v1046_v29  ;;  %v972_v34 = vadd.f32 %v971_v28, %v909_v18  ;;  %v910_v35 = vmul.f32 %v2400_v30, %v2956_v61 }
 0x1c1   : > { %2411 = vtanh.f32 %v712_v31  ;;  %v2025_v36 = vpop.f32.mrb[48].mxu0  ;;  %v1049_v38 = vmul.f32 %v2398_v25, %v911_v32 }
 0x1c2   : > { %v2402_v39 = vpop.eup %2401  ;;  %v727_v40 = vadd.f32 %v2025_v36, %v2945_v48  ;;  %v721_v41 = vpop.f32.mrb[49].mxu0  ;;  %2136 = vmatprep.mubr.f32.mxu1 %v1110_v33  ;;  %v973_v42 = vadd.f32 %v972_v34, %v910_v35  ;;  %v1048_v43 = vmul.f32 %v2400_v30, %v910_v35 }
 0x1c3   : > { %v2404_v44 = vpop.eup %2403  ;;  %v722_v45 = vadd.f32 %v2945_v48, %v721_v41  ;;  %2137 = vmatmul.mubr.f32.gmra.mrb[38].mxu1 %v1111_v37  ;;  %v913_v46 = vmul.f32 %v2402_v39, %v2956_v61  ;;  %v1113_v52 = vsub.f32 %v2956_v61, %v1049_v38 }
 0x1c4   : > { %2413 = vtanh.f32 %v727_v40  ;;  %v1112_v47 = vsub.f32 %v2956_v61, %v1048_v43  ;;  %v974_v49 = vadd.f32 %v973_v42, %v911_v32  ;;  %v912_v50 = vmul.f32 %v2404_v44, %v2956_v61 }
 0x1c5   : > { %2415 = vtanh.f32 %v722_v45  ;;  %v2028_v51 = vpop.f32.mrb[50].mxu0  ;;  %v1051_v53 = vmul.f32 %v2402_v39, %v913_v46 }
 0x1c6   : > { %v2406_v54 = vpop.eup %2405  ;;  %v737_v55 = vadd.f32 %v2028_v51, %v2945_v48  ;;  %v731_v56 = vpop.f32.mrb[51].mxu0  ;;  %2139 = vmatprep.mubr.f32.mxu1 %v1112_v47  ;;  %v975_v57 = vadd.f32 %v974_v49, %v912_v50  ;;  %v1050_v58 = vmul.f32 %v2404_v44, %v912_v50 }
 0x1c7   : > { %v2408_v59 = vpop.eup %2407  ;;  %v732_v60 = vadd.f32 %v2945_v48, %v731_v56  ;;  %2140 = vmatmul.mubr.f32.gmra.mrb[40].mxu1 %v1113_v52  ;;  %v915_v62 = vmul.f32 %v2406_v54, %v2956_v61  ;;  %v1115_v3 = vsub.f32 %v2956_v61, %v1051_v53 }
 0x1c8   : > { %2417 = vtanh.f32 %v737_v55  ;;  %v1114_v63 = vsub.f32 %v2956_v61, %v1050_v58  ;;  %v976_v0 = vadd.f32 %v975_v57, %v913_v46  ;;  %v914_v1 = vmul.f32 %v2408_v59, %v2956_v61 }
 0x1c9   : > { %2419 = vtanh.f32 %v732_v60  ;;  %v2031_v2 = vpop.f32.mrb[52].mxu0  ;;  %v1053_v4 = vmul.f32 %v2406_v54, %v915_v62 }
 0x1ca   : > { %v2410_v5 = vpop.eup %2409  ;;  %v747_v6 = vadd.f32 %v2031_v2, %v2945_v48  ;;  %v741_v7 = vpop.f32.mrb[53].mxu0  ;;  %2142 = vmatprep.mubr.f32.mxu1 %v1114_v63  ;;  %v977_v8 = vadd.f32 %v976_v0, %v914_v1  ;;  %v1052_v9 = vmul.f32 %v2408_v59, %v914_v1 }
 0x1cb   : > { %v2412_v10 = vpop.eup %2411  ;;  %v742_v11 = vadd.f32 %v2945_v48, %v741_v7  ;;  %2143 = vmatmul.mubr.f32.gmra.mrb[42].mxu1 %v1115_v3  ;;  %v917_v12 = vmul.f32 %v2410_v5, %v2956_v61  ;;  %v1117_v17 = vsub.f32 %v2956_v61, %v1053_v4 }
 0x1cc   : > { %2421 = vtanh.f32 %v747_v6  ;;  %v1116_v13 = vsub.f32 %v2956_v61, %v1052_v9  ;;  %v978_v14 = vadd.f32 %v977_v8, %v915_v62  ;;  %v916_v15 = vmul.f32 %v2412_v10, %v2956_v61 }
 0x1cd   : > { %2423 = vtanh.f32 %v742_v11  ;;  %v2034_v16 = vpop.f32.mrb[54].mxu0  ;;  %v1055_v18 = vmul.f32 %v2410_v5, %v917_v12 }
 0x1ce   : > { %v2414_v19 = vpop.eup %2413  ;;  %v757_v20 = vadd.f32 %v2034_v16, %v2945_v48  ;;  %v751_v21 = vpop.f32.mrb[55].mxu0  ;;  %2145 = vmatprep.mubr.f32.mxu1 %v1116_v13  ;;  %v979_v22 = vadd.f32 %v978_v14, %v916_v15  ;;  %v1054_v23 = vmul.f32 %v2412_v10, %v916_v15  ;;  %v2445_v14 = vld [vmem:[%s3285_s2] ss:$0 sm:$0xff] }
 0x1cf   : > { %v2416_v24 = vpop.eup %2415  ;;  %v752_v25 = vadd.f32 %v2945_v48, %v751_v21  ;;  %2146 = vmatmul.mubr.f32.gmra.mrb[44].mxu1 %v1117_v17  ;;  %v919_v26 = vmul.f32 %v2414_v19, %v2956_v61  ;;  %v1119_v31 = vsub.f32 %v2956_v61, %v1055_v18 }
 0x1d0   : > { %2425 = vtanh.f32 %v757_v20  ;;  %v1118_v27 = vsub.f32 %v2956_v61, %v1054_v23  ;;  %v980_v28 = vadd.f32 %v979_v22, %v917_v12  ;;  %v918_v29 = vmul.f32 %v2416_v24, %v2956_v61 }
 0x1d1   : > { %2427 = vtanh.f32 %v752_v25  ;;  %v2037_v30 = vpop.f32.mrb[56].mxu0  ;;  %v1057_v32 = vmul.f32 %v2414_v19, %v919_v26 }
 0x1d2   : > { %v2418_v33 = vpop.eup %2417  ;;  %v767_v34 = vadd.f32 %v2037_v30, %v2945_v48  ;;  %v761_v35 = vpop.f32.mrb[57].mxu0  ;;  %2148 = vmatprep.mubr.f32.mxu1 %v1118_v27  ;;  %v981_v36 = vadd.f32 %v980_v28, %v918_v29  ;;  %v1056_v37 = vmul.f32 %v2416_v24, %v918_v29  ;;  %v2446_v24 = vld [vmem:[%s3286_s3] ss:$0 sm:$0xff] }
 0x1d3   : > { %v2420_v38 = vpop.eup %2419  ;;  %v762_v39 = vadd.f32 %v2945_v48, %v761_v35  ;;  %2149 = vmatmul.mubr.f32.gmra.mrb[46].mxu1 %v1119_v31  ;;  %v921_v40 = vmul.f32 %v2418_v33, %v2956_v61  ;;  %v1121_v45 = vsub.f32 %v2956_v61, %v1057_v32 }
 0x1d4   : > { %2429 = vtanh.f32 %v767_v34  ;;  %v1120_v41 = vsub.f32 %v2956_v61, %v1056_v37  ;;  %v982_v42 = vadd.f32 %v981_v36, %v919_v26  ;;  %v920_v43 = vmul.f32 %v2420_v38, %v2956_v61 }
 0x1d5   : > { %2431 = vtanh.f32 %v762_v39  ;;  %v2040_v44 = vpop.f32.mrb[58].mxu0  ;;  %v1059_v46 = vmul.f32 %v2418_v33, %v921_v40 }
 0x1d6   : > { %v2422_v47 = vpop.eup %2421  ;;  %v777_v49 = vadd.f32 %v2040_v44, %v2945_v48  ;;  %v771_v50 = vpop.f32.mrb[59].mxu0  ;;  %2151 = vmatprep.mubr.f32.mxu1 %v1120_v41  ;;  %v983_v51 = vadd.f32 %v982_v42, %v920_v43  ;;  %v1058_v52 = vmul.f32 %v2420_v38, %v920_v43 }
 0x1d7   : > { %v2424_v53 = vpop.eup %2423  ;;  %v772_v54 = vadd.f32 %v2945_v48, %v771_v50  ;;  %2152 = vmatmul.mubr.f32.gmra.mrb[48].mxu1 %v1121_v45  ;;  %v923_v55 = vmul.f32 %v2422_v47, %v2956_v61  ;;  %v1123_v60 = vsub.f32 %v2956_v61, %v1059_v46 }
 0x1d8   : > { %2433 = vtanh.f32 %v777_v49  ;;  %v1122_v56 = vsub.f32 %v2956_v61, %v1058_v52  ;;  %v984_v57 = vadd.f32 %v983_v51, %v921_v40  ;;  %v922_v58 = vmul.f32 %v2424_v53, %v2956_v61 }
 0x1d9   : > { %2435 = vtanh.f32 %v772_v54  ;;  %v2043_v59 = vpop.f32.mrb[60].mxu0  ;;  %v1061_v62 = vmul.f32 %v2422_v47, %v923_v55 }
 0x1da   : > { %v2426_v63 = vpop.eup %2425  ;;  %v787_v0 = vadd.f32 %v2043_v59, %v2945_v48  ;;  %v781_v1 = vpop.f32.mrb[61].mxu0  ;;  %2154 = vmatprep.mubr.f32.mxu1 %v1122_v56  ;;  %v985_v2 = vadd.f32 %v984_v57, %v922_v58  ;;  %v1060_v3 = vmul.f32 %v2424_v53, %v922_v58 }
 0x1db   : > { %v2428_v4 = vpop.eup %2427  ;;  %v782_v5 = vadd.f32 %v2945_v48, %v781_v1  ;;  %2155 = vmatmul.mubr.f32.gmra.mrb[50].mxu1 %v1123_v60  ;;  %v925_v6 = vmul.f32 %v2426_v63, %v2956_v61  ;;  %v1125_v11 = vsub.f32 %v2956_v61, %v1061_v62 }
 0x1dc   : > { %2437 = vtanh.f32 %v787_v0  ;;  %v1124_v7 = vsub.f32 %v2956_v61, %v1060_v3  ;;  %v986_v8 = vadd.f32 %v985_v2, %v923_v55  ;;  %v924_v9 = vmul.f32 %v2428_v4, %v2956_v61 }
 0x1dd   : > { %2439 = vtanh.f32 %v782_v5  ;;  %v2046_v10 = vpop.f32.mrb[62].mxu0  ;;  %v1063_v12 = vmul.f32 %v2426_v63, %v925_v6 }
 0x1de   : > { %v2430_v13 = vpop.eup %2429  ;;  %v797_v48 = vadd.f32 %v2445_v14, %v2046_v10  ;;  %v791_v15 = vpop.f32.mrb[63].mxu0  ;;  %2157 = vmatprep.mubr.f32.mxu1 %v1124_v7  ;;  %v987_v16 = vadd.f32 %v986_v8, %v924_v9  ;;  %v1062_v17 = vmul.f32 %v2428_v4, %v924_v9 }
 0x1df   : > { %v2432_v18 = vpop.eup %2431  ;;  %v792_v19 = vadd.f32 %v2445_v14, %v791_v15  ;;  %2158 = vmatmul.mubr.f32.gmra.mrb[52].mxu1 %v1125_v11  ;;  %v927_v20 = vmul.f32 %v2430_v13, %v2956_v61  ;;  %v1127_v25 = vsub.f32 %v2446_v24, %v1063_v12 }
 0x1e0   : > { %2441 = vtanh.f32 %v797_v48  ;;  %v1126_v21 = vsub.f32 %v2956_v61, %v1062_v17  ;;  %v988_v22 = vadd.f32 %v987_v16, %v925_v6  ;;  %v926_v23 = vmul.f32 %v2432_v18, %v2956_v61 }
 0x1e1   : > { %2443 = vtanh.f32 %v792_v19  ;;  %v1065_v26 = vmul.f32 %v2430_v13, %v927_v20 }
 0x1e2   : > { %v2434_v27 = vpop.eup %2433  ;;  %2160 = vmatprep.mubr.f32.mxu1 %v1126_v21  ;;  %v989_v28 = vadd.f32 %v988_v22, %v926_v23  ;;  %v1064_v29 = vmul.f32 %v2432_v18, %v926_v23 }
 0x1e3   : > { %v2436_v30 = vpop.eup %2435  ;;  %2161 = vmatmul.mubr.f32.gmra.mrb[54].mxu1 %v1127_v25  ;;  %v929_v31 = vmul.f32 %v2446_v24, %v2434_v27  ;;  %v1129_v35 = vsub.f32 %v2446_v24, %v1065_v26 }
 0x1e4   : > { %v1128_v32 = vsub.f32 %v2446_v24, %v1064_v29  ;;  %v990_v33 = vadd.f32 %v989_v28, %v927_v20  ;;  %v928_v34 = vmul.f32 %v2446_v24, %v2436_v30 }
 0x1e5   : > { %v1067_v36 = vmul.f32 %v2434_v27, %v929_v31 }
 0x1e6   : > { %v2438_v61 = vpop.eup %2437  ;;  %2163 = vmatprep.mubr.f32.mxu1 %v1128_v32  ;;  %v1066_v37 = vmul.f32 %v2436_v30, %v928_v34  ;;  %v991_v38 = vadd.f32 %v990_v33, %v928_v34 }
 0x1e7   : > { %v2440_v39 = vpop.eup %2439  ;;  %2164 = vmatmul.mubr.f32.gmra.mrb[56].mxu1 %v1129_v35  ;;  %v931_v40 = vmul.f32 %v2446_v24, %v2438_v61  ;;  %v1131_v44 = vsub.f32 %v2446_v24, %v1067_v36 }
 0x1e8   : > { %v1130_v41 = vsub.f32 %v2446_v24, %v1066_v37  ;;  %v930_v42 = vmul.f32 %v2446_v24, %v2440_v39  ;;  %v992_v43 = vadd.f32 %v991_v38, %v929_v31 }
 0x1e9   : > { %v1069_v45 = vmul.f32 %v2438_v61, %v931_v40 }
 0x1ea   : > { %v2442_v46 = vpop.eup %2441  ;;  %2166 = vmatprep.mubr.f32.mxu1 %v1130_v41  ;;  %v1068_v47 = vmul.f32 %v2440_v39, %v930_v42  ;;  %v993_v49 = vadd.f32 %v992_v43, %v930_v42 }
 0x1eb   : > { %v2444_v50 = vpop.eup %2443  ;;  %2167 = vmatmul.mubr.f32.gmra.mrb[58].mxu1 %v1131_v44  ;;  %v933_v51 = vmul.f32 %v2446_v24, %v2442_v46  ;;  %v1133_v55 = vsub.f32 %v2446_v24, %v1069_v45 }
 0x1ec   : > { %v1132_v52 = vsub.f32 %v2446_v24, %v1068_v47  ;;  %v932_v53 = vmul.f32 %v2446_v24, %v2444_v50  ;;  %v994_v54 = vadd.f32 %v993_v49, %v931_v40 }
 0x1ed   : > { %v1071_v56 = vmul.f32 %v2442_v46, %v933_v51 }
 0x1ee   : > { %2169 = vmatprep.mubr.f32.mxu1 %v1132_v52  ;;  %v995_v57 = vadd.f32 %v994_v54, %v932_v53  ;;  %v1070_v58 = vmul.f32 %v2444_v50, %v932_v53 }
 0x1ef   : > { %2170 = vmatmul.mubr.f32.gmra.mrb[60].mxu1 %v1133_v55  ;;  %v1135_v62 = vsub.f32 %v2446_v24, %v1071_v56 }
 0x1f0   : > { %v996_v59 = vadd.f32 %v995_v57, %v933_v51  ;;  %v1134_v60 = vsub.f32 %v2446_v24, %v1070_v58 }
 0x1f2   : > { %997 = vadd.xlane.f32.xlu0 %v996_v59  ;;  %2172 = vmatprep.mubr.f32.mxu1 %v1134_v60 }
 0x1f3   : > { %2173 = vmatmul.mubr.f32.gmra.mrb[62].mxu1 %v1135_v62 }
 0x24a   : > { %v2081_v63 = vpop.f32.mrb[0].mxu1 }
 0x24b   : > { %1522 = vst [vmem:[%s3135_s13 + $0x8] sm:$0xff] %v2081_v63  ;;  %v1202_v0 = vpop.f32.mrb[1].mxu1 }
 0x24c   : > { %1521 = vst [vmem:[%s3135_s13] sm:$0xff] %v1202_v0 }
 0x24e   : > { %v2084_v1 = vpop.f32.mrb[2].mxu1 }
 0x24f   : > { %1524 = vst [vmem:[%s3135_s13 + $0x18] sm:$0xff] %v2084_v1  ;;  %v1212_v2 = vpop.f32.mrb[3].mxu1 }
 0x250   : > { %1523 = vst [vmem:[%s3135_s13 + $0x10] sm:$0xff] %v1212_v2 }
 0x252   : > { %v2087_v3 = vpop.f32.mrb[4].mxu1 }
 0x253   : > { %1526 = vst [vmem:[%s3135_s13 + $0x28] sm:$0xff] %v2087_v3  ;;  %v1222_v4 = vpop.f32.mrb[5].mxu1 }
 0x254   : > { %1525 = vst [vmem:[%s3135_s13 + $0x20] sm:$0xff] %v1222_v4 }
 0x256   : > { %v2090_v5 = vpop.f32.mrb[6].mxu1 }
 0x257   : > { %1528 = vst [vmem:[%s3135_s13 + $0x38] sm:$0xff] %v2090_v5  ;;  %v1232_v6 = vpop.f32.mrb[7].mxu1 }
 0x258   : > { %1527 = vst [vmem:[%s3135_s13 + $0x30] sm:$0xff] %v1232_v6 }
 0x25a   : > { %v2093_v7 = vpop.f32.mrb[8].mxu1 }
 0x25b   : > { %1530 = vst [vmem:[%s3135_s13 + $0x48] sm:$0xff] %v2093_v7  ;;  %v1242_v8 = vpop.f32.mrb[9].mxu1 }
 0x25c   : > { %1529 = vst [vmem:[%s3135_s13 + $0x40] sm:$0xff] %v1242_v8 }
 0x25e   : > { %v2096_v9 = vpop.f32.mrb[10].mxu1 }
 0x25f   : > { %1532 = vst [vmem:[%s3135_s13 + $0x58] sm:$0xff] %v2096_v9  ;;  %v1252_v10 = vpop.f32.mrb[11].mxu1 }
 0x260   : > { %1531 = vst [vmem:[%s3135_s13 + $0x50] sm:$0xff] %v1252_v10 }
 0x262   : > { %v2099_v11 = vpop.f32.mrb[12].mxu1 }
 0x263   : > { %1534 = vst [vmem:[%s3135_s13 + $0x68] sm:$0xff] %v2099_v11  ;;  %v1262_v12 = vpop.f32.mrb[13].mxu1 }
 0x264   : > { %1533 = vst [vmem:[%s3135_s13 + $0x60] sm:$0xff] %v1262_v12 }
 0x266   : > { %v2102_v13 = vpop.f32.mrb[14].mxu1 }
 0x267   : > { %1536 = vst [vmem:[%s3135_s13 + $0x78] sm:$0xff] %v2102_v13  ;;  %v1272_v14 = vpop.f32.mrb[15].mxu1 }
 0x268   : > { %1535 = vst [vmem:[%s3135_s13 + $0x70] sm:$0xff] %v1272_v14 }
 0x26a   : > { %v2105_v48 = vpop.f32.mrb[16].mxu1 }
 0x26b   : > { %1538 = vst [vmem:[%s3135_s13 + $0x88] sm:$0xff] %v2105_v48  ;;  %v1282_v15 = vpop.f32.mrb[17].mxu1 }
 0x26c   : > { %1537 = vst [vmem:[%s3135_s13 + $0x80] sm:$0xff] %v1282_v15 }
 0x26e   : > { %v2108_v16 = vpop.f32.mrb[18].mxu1 }
 0x26f   : > { %1540 = vst [vmem:[%s3135_s13 + $0x98] sm:$0xff] %v2108_v16  ;;  %v1292_v17 = vpop.f32.mrb[19].mxu1 }
 0x270   : > { %1539 = vst [vmem:[%s3135_s13 + $0x90] sm:$0xff] %v1292_v17 }
 0x272   : > { %v2111_v18 = vpop.f32.mrb[20].mxu1 }
 0x273   : > { %1542 = vst [vmem:[%s3135_s13 + $0xa8] sm:$0xff] %v2111_v18  ;;  %v1302_v19 = vpop.f32.mrb[21].mxu1 }
 0x274   : > { %1541 = vst [vmem:[%s3135_s13 + $0xa0] sm:$0xff] %v1302_v19 }
 0x276   : > { %v2114_v20 = vpop.f32.mrb[22].mxu1 }
 0x277   : > { %1544 = vst [vmem:[%s3135_s13 + $0xb8] sm:$0xff] %v2114_v20  ;;  %v1312_v21 = vpop.f32.mrb[23].mxu1 }
 0x278   : > { %1543 = vst [vmem:[%s3135_s13 + $0xb0] sm:$0xff] %v1312_v21 }
 0x27a   : > { %v2117_v22 = vpop.f32.mrb[24].mxu1 }
 0x27b   : > { %1546 = vst [vmem:[%s3135_s13 + $0xc8] sm:$0xff] %v2117_v22  ;;  %v1322_v23 = vpop.f32.mrb[25].mxu1 }
 0x27c   : > { %1545 = vst [vmem:[%s3135_s13 + $0xc0] sm:$0xff] %v1322_v23 }
 0x27e   : > { %v2120_v24 = vpop.f32.mrb[26].mxu1 }
 0x27f   : > { %1548 = vst [vmem:[%s3135_s13 + $0xd8] sm:$0xff] %v2120_v24  ;;  %v998_v25 = vpop.xlane.xlu0 %997  ;;  %v1332_v26 = vpop.f32.mrb[27].mxu1 }
 0x280   : > { %v999_v27 = vrot.slane %v998_v25, 4  ;;  %1547 = vst [vmem:[%s3135_s13 + $0xd0] sm:$0xff] %v1332_v26 }
 0x282   : > { %v1000_v28 = vadd.f32 %v999_v27, %v998_v25  ;;  %v2123_v29 = vpop.f32.mrb[28].mxu1 }
 0x283   : > { %1550 = vst [vmem:[%s3135_s13 + $0xe8] sm:$0xff] %v2123_v29  ;;  %v1342_v30 = vpop.f32.mrb[29].mxu1 }
 0x284   : > { %v1001_v31 = vrot.slane %v1000_v28, 2  ;;  %1549 = vst [vmem:[%s3135_s13 + $0xe0] sm:$0xff] %v1342_v30 }
 0x286   : > { %v2126_v32 = vpop.f32.mrb[30].mxu1  ;;  %v1002_v33 = vadd.f32 %v1001_v31, %v1000_v28 }
 0x287   : > { %1552 = vst [vmem:[%s3135_s13 + $0xf8] sm:$0xff] %v2126_v32  ;;  %v1352_v34 = vpop.f32.mrb[31].mxu1 }
 0x288   : > { %1551 = vst [vmem:[%s3135_s13 + $0xf0] sm:$0xff] %v1352_v34  ;;  %v1003_v35 = vrot.slane %v1002_v33, 1 }
 0x28a   : > { %v2129_v36 = vpop.f32.mrb[32].mxu1  ;;  %v1004_v61 = vadd.f32 %v1003_v35, %v1002_v33 }
 0x28b   : > { %1554 = vst [vmem:[%s3135_s13 + $0x108] sm:$0xff] %v2129_v36  ;;  %v1362_v37 = vpop.f32.mrb[33].mxu1 }
 0x28c   : > { %1553 = vst [vmem:[%s3135_s13 + $0x100] sm:$0xff] %v1362_v37  ;;  %2239 = vpush %v1004_v61 }
 0x28e   : > { %v2132_v38 = vpop.f32.mrb[34].mxu1 }
 0x28f   : > { %1556 = vst [vmem:[%s3135_s13 + $0x118] sm:$0xff] %v2132_v38  ;;  %v1372_v39 = vpop.f32.mrb[35].mxu1 }
 0x290   : > { %1555 = vst [vmem:[%s3135_s13 + $0x110] sm:$0xff] %v1372_v39 }
 0x292   : > { %v2135_v40 = vpop.f32.mrb[36].mxu1 }
 0x293   : > { %1558 = vst [vmem:[%s3135_s13 + $0x128] sm:$0xff] %v2135_v40  ;;  %v1382_v41 = vpop.f32.mrb[37].mxu1 }
 0x294   : > { %1557 = vst [vmem:[%s3135_s13 + $0x120] sm:$0xff] %v1382_v41 }
 0x296   : > { %v2138_v42 = vpop.f32.mrb[38].mxu1 }
 0x297   : > { %1560 = vst [vmem:[%s3135_s13 + $0x138] sm:$0xff] %v2138_v42  ;;  %v1392_v43 = vpop.f32.mrb[39].mxu1 }
 0x298   : > { %1559 = vst [vmem:[%s3135_s13 + $0x130] sm:$0xff] %v1392_v43 }
 0x29a   : > { %v2141_v44 = vpop.f32.mrb[40].mxu1 }
 0x29b   : > { %1562 = vst [vmem:[%s3135_s13 + $0x148] sm:$0xff] %v2141_v44  ;;  %v1402_v45 = vpop.f32.mrb[41].mxu1 }
 0x29c   : > { %1561 = vst [vmem:[%s3135_s13 + $0x140] sm:$0xff] %v1402_v45 }
 0x29e   : > { %v2144_v46 = vpop.f32.mrb[42].mxu1 }
 0x29f   : > { %1564 = vst [vmem:[%s3135_s13 + $0x158] sm:$0xff] %v2144_v46  ;;  %v1412_v47 = vpop.f32.mrb[43].mxu1 }
 0x2a0   : > { %1563 = vst [vmem:[%s3135_s13 + $0x150] sm:$0xff] %v1412_v47 }
 0x2a2   : > { %v2147_v49 = vpop.f32.mrb[44].mxu1 }
 0x2a3   : > { %1566 = vst [vmem:[%s3135_s13 + $0x168] sm:$0xff] %v2147_v49  ;;  %v1422_v50 = vpop.f32.mrb[45].mxu1 }
 0x2a4   : > { %1565 = vst [vmem:[%s3135_s13 + $0x160] sm:$0xff] %v1422_v50 }
 0x2a6   : > { %v2150_v51 = vpop.f32.mrb[46].mxu1 }
 0x2a7   : > { %1568 = vst [vmem:[%s3135_s13 + $0x178] sm:$0xff] %v2150_v51  ;;  %v1432_v52 = vpop.f32.mrb[47].mxu1 }
 0x2a8   : > { %1567 = vst [vmem:[%s3135_s13 + $0x170] sm:$0xff] %v1432_v52 }
 0x2aa   : > { %v2153_v53 = vpop.f32.mrb[48].mxu1 }
 0x2ab   : > { %1570 = vst [vmem:[%s3135_s13 + $0x188] sm:$0xff] %v2153_v53  ;;  %v1442_v54 = vpop.f32.mrb[49].mxu1 }
 0x2ac   : > { %1569 = vst [vmem:[%s3135_s13 + $0x180] sm:$0xff] %v1442_v54 }
 0x2ae   : > { %v2156_v55 = vpop.f32.mrb[50].mxu1 }
 0x2af   : > { %1572 = vst [vmem:[%s3135_s13 + $0x198] sm:$0xff] %v2156_v55  ;;  %v1452_v56 = vpop.f32.mrb[51].mxu1 }
 0x2b0   : > { %1571 = vst [vmem:[%s3135_s13 + $0x190] sm:$0xff] %v1452_v56 }
 0x2b2   : > { %v2159_v57 = vpop.f32.mrb[52].mxu1 }
 0x2b3   : > { %1574 = vst [vmem:[%s3135_s13 + $0x1a8] sm:$0xff] %v2159_v57  ;;  %v1462_v58 = vpop.f32.mrb[53].mxu1 }
 0x2b4   : > { %1573 = vst [vmem:[%s3135_s13 + $0x1a0] sm:$0xff] %v1462_v58 }
 0x2b6   : > { %v2162_v59 = vpop.f32.mrb[54].mxu1 }
 0x2b7   : > { %1576 = vst [vmem:[%s3135_s13 + $0x1b8] sm:$0xff] %v2162_v59  ;;  %v1472_v60 = vpop.f32.mrb[55].mxu1 }
 0x2b8   : > { %1575 = vst [vmem:[%s3135_s13 + $0x1b0] sm:$0xff] %v1472_v60 }
 0x2ba   : > { %v2165_v62 = vpop.f32.mrb[56].mxu1 }
 0x2bb   : > { %1578 = vst [vmem:[%s3135_s13 + $0x1c8] sm:$0xff] %v2165_v62  ;;  %v1482_v63 = vpop.f32.mrb[57].mxu1 }
 0x2bc   : > { %1577 = vst [vmem:[%s3135_s13 + $0x1c0] sm:$0xff] %v1482_v63 }
 0x2bd   : > { %s2240_s7 = spop %2239 }
 0x2be   : > { %v1006_v0 = vstv %s2240_s7  ;;  %v2168_v1 = vpop.f32.mrb[58].mxu1 }
 0x2bf   : > { %1007 = vst [vmem:[%s301_s10] sm:$0x1] %v1006_v0  ;;  %1580 = vst [vmem:[%s3135_s13 + $0x1d8] sm:$0xff] %v2168_v1  ;;  %v1492_v2 = vpop.f32.mrb[59].mxu1 }
 0x2c0   : > { %1579 = vst [vmem:[%s3135_s13 + $0x1d0] sm:$0xff] %v1492_v2 }
 0x2c1   : > { %2546 = shalt.err (!%p2543_p1)
}
 0x2c2   : > { %s2547_s12 = scalar_lea.hbm %s3202_s29, 16  ;;  %s2551_s7 = scalar_lea.hbm %s3288_s5, 32 }
 0x2c3   : > { %p2548_p13 = scmp.ne.s32.totalorder %s3202_s29, %s2547_s12  ;;  %p2552_p4 = scmp.lt.u32.totalorder %s3202_s29, %s3288_s5 }
 0x2c4   : > { %p2553_p5 = scmp.lt.u32.totalorder %s2551_s7, %s2547_s12  ;;  %p2555_p11 = scmp.lt.u32.totalorder %s2547_s12, %s3202_s29 }
 0x2c5   : > { %p2549_p6 = pnand %p2548_p13, %p3303_p0 }
 0x2c6   : > { %p2554_p8 = por %p2553_p5, %p2552_p4 }
 0x2c7   : > { %p2550_p10 = pneg %p2549_p6 }
 0x2c8   : > { %p2556_p2 = por %p2555_p11, %p2554_p8 }
 0x2ca   : > { %p2557_p3 = pnand %p2556_p2, %p2550_p10 }
 0x2cc   : > { %2560 = shalt.err (!%p2557_p3)
}
 0x2cd   : > { %2251 = dma.vmem_to_hbm [thread:$0]  (%p3303_p0), %s3197_s15, 16, %s3202_s29, %s1586_s19   ;;  %v2171_v3 = vpop.f32.mrb[60].mxu1 }
 0x2ce   : > { %s1758_s20 = sshll.u32 %s2702_s25, 13  ;;  %1582 = vst [vmem:[%s3135_s13 + $0x1e8] sm:$0xff] %v2171_v3  ;;  %v1502_v4 = vpop.f32.mrb[61].mxu1  ;;  %s1616_s16 = sshll.u32 %s3135_s13, 4  ;;  %s3237_s16 = int_to_ptr.vmem [resolvable:$true] %s1616_s16 }
 0x2cf   : > { %1581 = vst [vmem:[%s3135_s13 + $0x1e0] sm:$0xff] %v1502_v4  ;;  %s3235_s12 = scalar_lea.hbm %s3289_s6, %s1758_s20  ;;  %v2174_v5 = vpop.f32.mrb[62].mxu1  ;;  %s1590_s15 = scalar_lea.sflag [#allocation10], %s2862_s30 }
 0x2d0   : > { %1584 = vst [vmem:[%s3135_s13 + $0x1f8] sm:$0xff] %v2174_v5  ;;  %v1512_v6 = vpop.f32.mrb[63].mxu1  ;;  %s2561_s25 = scalar_lea.vmem %s3237_s16, 8192  ;;  %s2643_s29 = smov [#allocation9]  }
 0x2d1   : > { %1583 = vst [vmem:[%s3135_s13 + $0x1f0] sm:$0xff] %v1512_v6  ;;  %p2562_p7 = scmp.ne.s32.totalorder %s3237_s16, %s2561_s25  ;;  %s2565_s19 = sshll.u32 %s2643_s29, 4  ;;  %s2566_s19 = int_to_ptr.vmem [resolvable:$false] %s2565_s19 }
 0x2d2   : > { %s2567_s10 = scalar_lea.vmem %s2566_s19, 16384  ;;  %p2568_p1 = scmp.lt.s32.totalorder %s3237_s16, %s2566_s19 }
 0x2d3   : > { %p2563_p9 = pnand %p2562_p7, %p3303_p0  ;;  %p2569_p13 = scmp.lt.s32.totalorder %s2567_s10, %s2561_s25 }
 0x2d5   : > { %p2564_p12 = pneg %p2563_p9  ;;  %p2570_p6 = por %p2569_p13, %p2568_p1 }
 0x2d7   : > { %p2571_p10 = pnand %p2570_p6, %p2564_p12 }
 0x2d9   : > { %2574 = shalt.err (!%p2571_p10)
}
 0x2da   : > { %s2575_s13 = scalar_lea.hbm %s3235_s12, 8192  ;;  %s2579_s18 = scalar_lea.hbm %s3289_s6, 16384 }
 0x2db   : > { %p2576_p4 = scmp.ne.s32.totalorder %s3235_s12, %s2575_s13  ;;  %p2580_p11 = scmp.lt.u32.totalorder %s3235_s12, %s3289_s6 }
 0x2dc   : > { %p2581_p2 = scmp.lt.u32.totalorder %s2579_s18, %s2575_s13  ;;  %p2583_p7 = scmp.lt.u32.totalorder %s2575_s13, %s3235_s12 }
 0x2dd   : > { %p2577_p5 = pnand %p2576_p4, %p3303_p0 }
 0x2de   : > { %p2582_p3 = por %p2581_p2, %p2580_p11 }
 0x2df   : > { %p2578_p8 = pneg %p2577_p5 }
 0x2e0   : > { %p2584_p9 = por %p2583_p7, %p2582_p3 }
 0x2e2   : > { %p2585_p12 = pnand %p2584_p9, %p2578_p8 }
 0x2e4   : > { %2588 = shalt.err (!%p2585_p12)
}
 0x2e5   : > { %s2644_s17 = smov 128   ;;  %s2645_s26 = smov 8  }
 0x2e6   : > { %2252 = dma.vmem_to_hbm [thread:$0]  (%p3303_p0), %s3237_s16, 8192, %s3235_s12, %s1590_s15, %s2644_s17, %s2644_s17, %s2645_s26  }
 0x2e7 PF: > { %s1631_s25 = sand.u32 1, %s2623_s21   ;;  %p3304_p1 = scmp.ne.s32.totalorder %s3294_s28, 0 }
 0x2e8   : > { %p3305_p13 = scmp.ge.s32.totalorder %s2635_s24, 2  ;;  %s1632_s29 = scalar_lea.sflag [#allocation4], %s1631_s25 }
 0x2ea   : > { %p2267_p6 = pnand %p3305_p13, %p3304_p1 }
 0x2ec   : > { %2614 = dma.done.wait (!%p2267_p6), %s1632_s29, 16  }
 0x2ed   : > { %2616 = vsyncadd (!%p2267_p6), %s1632_s29, 4294967280  ;;  %s1640_s19 = scalar_lea.sflag [#allocation10], %s1631_s25 }
 0x2ee   : > { %2618 = dma.done.wait (!%p2267_p6), %s1640_s19, 8192  }
 0x2ef   : > { %2620 = vsyncadd (!%p2267_p6), %s1640_s19, 4294959104  ;;  %p24_p0 = scmp.ge.s32.totalorder %s2797_s8, 4   ;;  %s3306_s21 = smov %s2627_s22 }
 0x2f0   : > { %s3307_s22 = smov %s2631_s23  ;;  %s3308_s23 = smov %s2813_s11 }
 0x2f1   : > { %s3309_s24 = smov %s2797_s8  ;;  %26 = sbr.rel (!%p24_p0) target bundleno = 8 (0x8), region = 110 }
 0x2f8   :  { %1645 = vsyncpa [#allocation3], 1 }
 0x2f9   :  { %1647 = vsyncpa [#allocation3 + $0x1], 1 }
 0x2fa   :  { %1648 = vsyncpa [#allocation6], 1 }
 0x2fb   :  { %1649 = vsyncpa [#allocation4], 1 }
 0x2fc   :  { %1651 = vsyncpa [#allocation4 + $0x1], 1 }
 0x2fd   :  { %1652 = vsyncpa [#allocation10], 1 }
 0x2fe   :  { %1654 = vsyncpa [#allocation10 + $0x1], 1 }

</bundles_post_ra>
